<compile_context>
chip_gen: v7x
topology: tpu7x:2x2x1
jax: 0.10.0
libtpu: 0.0.40
codegen_flags: <defaults>
</compile_context>

<pallas_src>
from functools import partial

import jax
import jax.numpy as jnp
from jax.experimental import pallas as pl
from jax.experimental.pallas import tpu as pltpu

POOL = 4  # MaxPool1d(4)


def _full_spec(arr):
    zeros = (0,) * arr.ndim
    return pl.BlockSpec(arr.shape, lambda i, _z=zeros: _z)


def _cnn_kernel(patches_ref, w1_ref, b1_ref, w2_hbm, b2_ref, wl1_hbm, bl1_ref,
                wl2_ref, bl2_ref, wl3_ref, bl3_ref,
                o_ref,
                w2_vmem, wl1_vmem, sem,
                *, B, Lp1, Lp2, K):
    """Whole batch in one step: conv1+pool -> conv2+pool -> 3x linear -> softmax."""
    f32 = jnp.float32

    # Kick off the big late-used weight fetches; they overlap conv1 compute.
    cp_w2 = pltpu.make_async_copy(w2_hbm, w2_vmem, sem.at[0])
    cp_wl1 = pltpu.make_async_copy(wl1_hbm, wl1_vmem, sem.at[1])
    cp_w2.start()
    cp_wl1.start()

    # ---- conv1: single im2col matmul (rows are phase-major over the pool) ----
    # patches row = p*(B*Lp1) + b*Lp1 + j  <->  window at position 4j+p of batch b
    a1 = jnp.dot(patches_ref[...], w1_ref[...],
                 preferred_element_type=f32)                 # (4*B*Lp1, 128)
    BL1 = B * Lp1
    m1 = a1[0:BL1]
    for p in range(1, POOL):
        m1 = jnp.maximum(m1, a1[p * BL1:(p + 1) * BL1])      # pool over phase
    y1 = jnp.maximum(m1 + b1_ref[...], 0.0)                  # (B*Lp1, 128), row=b*Lp1+j

    # ---- conv2: taps folded into the contraction (K*128 = 1024) ----
    T2 = POOL * Lp2                                          # conv2 positions used
    z_rows = []
    for b in range(B):
        base = b * Lp1
        z_rows.append(jnp.concatenate(
            [y1[base + k: base + k + T2, :] for k in range(K)], axis=1))
    z = jnp.concatenate(z_rows, axis=0)                      # (B*T2, K*128)

    cp_w2.wait()
    a2 = jnp.dot(z, w2_vmem[...], preferred_element_type=f32)  # (B*T2, 256)

    # maxpool(4) over conv2 positions; bias + ReLU hoisted past the max.
    m2_rows = []
    for r in range(B * Lp2):
        blk = a2[POOL * r: POOL * (r + 1), :]                # contiguous 4 rows
        m2_rows.append(jnp.max(blk, axis=0, keepdims=True))
    m2 = jnp.concatenate(m2_rows, axis=0)                    # (B*Lp2, 256)
    y2 = jnp.maximum(m2 + b2_ref[...], 0.0)

    # ---- linear1 (torch flatten(1) order folded into wl1r layout) ----
    C2 = y2.shape[1]
    y2f = y2.reshape(B, Lp2 * C2)                            # (B, Lp2*256)
    cp_wl1.wait()
    h1 = jnp.maximum(jnp.dot(y2f, wl1_vmem[...], preferred_element_type=f32)
                     + bl1_ref[...], 0.0)                    # (B, 256)
    h2 = jnp.maximum(jnp.dot(h1, wl2_ref[...], preferred_element_type=f32)
                     + bl2_ref[...], 0.0)                    # (B, 128)
    h3 = jnp.maximum(jnp.dot(h2, wl3_ref[...], preferred_element_type=f32)
                     + bl3_ref[...], 0.0)                    # (B, num_classes)

    # ---- softmax over classes ----
    zc = h3 - jnp.max(h3, axis=-1, keepdims=True)
    e = jnp.exp(zc)
    o_ref[...] = e / jnp.sum(e, axis=-1, keepdims=True)


def prepare_params(params, L):
    """One-time re-layout of PyTorch-layout weights into kernel-friendly form."""
    w1, b1, w2, b2, wl1, bl1, wl2, bl2, wl3, bl3 = params
    C1, Cin, K = w1.shape
    C2 = w2.shape[0]
    H1 = wl1.shape[0]
    Lp1 = (L - K + 1) // POOL
    Lp2 = (Lp1 - K + 1) // POOL
    # conv weights (Cout, Cin, K) -> (K*Cin, Cout): im2col contraction layout.
    w1r = jnp.transpose(w1, (2, 1, 0)).reshape(K * Cin, C1)
    w2r = jnp.transpose(w2, (2, 1, 0)).reshape(K * C1, C2)
    # linear1 weight (H1, C2*Lp2) with torch flatten index c*Lp2 + l
    # -> (Lp2*C2, H1) with row index l*C2 + c (matches kernel's y2 flatten).
    wl1r = jnp.transpose(wl1.reshape(H1, C2, Lp2), (2, 1, 0)).reshape(Lp2 * C2, H1)
    return (w1r, b1.reshape(1, -1), w2r, b2.reshape(1, -1),
            wl1r, bl1.reshape(1, -1), wl2.T, bl2.reshape(1, -1),
            wl3.T, bl3.reshape(1, -1))


def cnn_forward(x_ncl, prep):
    """x_ncl: (B, num_features, L) float32 (PyTorch NCL layout)."""
    (w1r, b1r, w2r, b2r, wl1r, bl1r, wl2r, bl2r, wl3r, bl3r) = prep
    B, Cin, L = x_ncl.shape
    KC, C1 = w1r.shape
    K = KC // Cin
    num_classes = wl3r.shape[1]
    Lp1 = (L - K + 1) // POOL
    Lp2 = (Lp1 - K + 1) // POOL

    # Wrapper-side im2col for conv1 (folded into the NCL->NLC glue):
    # row p*(B*Lp1) + b*Lp1 + j holds the K*Cin window at position 4j+p.
    x_nlc = jnp.transpose(x_ncl, (0, 2, 1))                          # (B, L, Cin)
    pos = jnp.arange(POOL * Lp1)[:, None] + jnp.arange(K)[None, :]   # (4*Lp1, K)
    patches = x_nlc[:, pos, :]                                       # (B, 4Lp1, K, Cin)
    patches = patches.reshape(B, Lp1, POOL, K * Cin)
    patches = jnp.transpose(patches, (2, 0, 1, 3)).reshape(POOL * B * Lp1, K * Cin)

    kern = partial(_cnn_kernel, B=B, Lp1=Lp1, Lp2=Lp2, K=K)
    out = pl.pallas_call(
        kern,
        out_shape=jax.ShapeDtypeStruct((B, num_classes), jnp.float32),
        grid=(1,),                                  # single step: whole batch
        in_specs=[_full_spec(patches), _full_spec(w1r), _full_spec(b1r),
                  pl.BlockSpec(memory_space=pl.ANY),   # w2r stays in HBM (manual DMA)
                  _full_spec(b2r),
                  pl.BlockSpec(memory_space=pl.ANY),   # wl1r stays in HBM (manual DMA)
                  _full_spec(bl1r), _full_spec(wl2r), _full_spec(bl2r),
                  _full_spec(wl3r), _full_spec(bl3r)],
        out_specs=pl.BlockSpec((B, num_classes), lambda i: (0, 0)),
        scratch_shapes=[pltpu.VMEM(w2r.shape, jnp.float32),
                        pltpu.VMEM(wl1r.shape, jnp.float32),
                        pltpu.SemaphoreType.DMA((2,))],
        compiler_params=pltpu.CompilerParams(dimension_semantics=("arbitrary",)),
    )(patches, w1r, b1r, w2r, b2r, wl1r, bl1r, wl2r, bl2r, wl3r, bl3r)
    return out


# ---------------- pure-JAX reference (for correctness check) ----------------

def cnn_forward_ref(x, params):
    w1, b1, w2, b2, wl1, bl1, wl2, bl2, wl3, bl3 = params
    dn = ('NCH', 'OIH', 'NCH')

    def conv1d(t, w, b):
        y = jax.lax.conv_general_dilated(t, w, (1,), 'VALID', dimension_numbers=dn)
        return y + b[None, :, None]

    def maxpool4(y):
        B, C, L = y.shape
        Lp = L // 4
        return jnp.max(y[:, :, :4 * Lp].reshape(B, C, Lp, 4), axis=-1)

    relu = lambda t: jnp.maximum(t, 0.0)
    y = maxpool4(relu(conv1d(x, w1, b1)))
    y = maxpool4(relu(conv1d(y, w2, b2)))
    y = y.reshape(y.shape[0], -1)
    y = relu(y @ wl1.T + bl1)
    y = relu(y @ wl2.T + bl2)
    y = relu(y @ wl3.T + bl3)
    return jax.nn.softmax(y, axis=1)


if __name__ == "__main__":
    B, num_features, L, num_classes = 2, 4, 64, 10
    K = 8
    key = jax.random.PRNGKey(0)
    ks = jax.random.split(key, 11)

    def uinit(k, shape, fan_in):
        bound = 1.0 / (fan_in ** 0.5)
        return jax.random.uniform(k, shape, jnp.float32, -bound, bound)

    # Derived sizes (LazyLinear in_features = 256 * pooled length after conv2).
    Lp1 = (L - K + 1) // 4
    Lp2 = (Lp1 - K + 1) // 4
    lin_in = 256 * Lp2

    w1 = uinit(ks[0], (128, num_features, K), num_features * K)
    b1 = uinit(ks[1], (128,), num_features * K)
    w2 = uinit(ks[2], (256, 128, K), 128 * K)
    b2 = uinit(ks[3], (256,), 128 * K)
    wl1 = uinit(ks[4], (256, lin_in), lin_in)
    bl1 = uinit(ks[5], (256,), lin_in)
    wl2 = uinit(ks[6], (128, 256), 256)
    bl2 = uinit(ks[7], (128,), 256)
    wl3 = uinit(ks[8], (num_classes, 128), 128)
    bl3 = uinit(ks[9], (num_classes,), 128)
    params = (w1, b1, w2, b2, wl1, bl1, wl2, bl2, wl3, bl3)

    x = jax.random.normal(ks[10], (B, num_features, L), jnp.float32)

    prep = prepare_params(params, L)          # one-time weight re-layout
    fwd = jax.jit(cnn_forward)
    out = jax.block_until_ready(fwd(x, prep))
    ref = jax.block_until_ready(cnn_forward_ref(x, params))
    assert out.shape == (B, num_classes)
    assert jnp.allclose(out, ref, atol=1e-4, rtol=1e-4), \
        float(jnp.max(jnp.abs(out - ref)))
    print("KERNEL_OK")
</pallas_src>

<mosaic_0001>
module attributes {stable_mosaic.version = 11 : i64} {
  func.func @_cnn_kernel(%arg0: i32, %arg1: memref<112x32xf32, #tpu.memory_space<vmem>>, %arg2: memref<32x128xf32, #tpu.memory_space<vmem>>, %arg3: memref<1x128xf32, #tpu.memory_space<vmem>>, %arg4: memref<1024x256xf32, #tpu.memory_space<any>>, %arg5: memref<1x256xf32, #tpu.memory_space<vmem>>, %arg6: memref<256x256xf32, #tpu.memory_space<any>>, %arg7: memref<1x256xf32, #tpu.memory_space<vmem>>, %arg8: memref<256x128xf32, #tpu.memory_space<vmem>>, %arg9: memref<1x128xf32, #tpu.memory_space<vmem>>, %arg10: memref<128x10xf32, #tpu.memory_space<vmem>>, %arg11: memref<1x10xf32, #tpu.memory_space<vmem>>, %arg12: memref<2x10xf32, #tpu.memory_space<vmem>>, %arg13: memref<1024x256xf32, #tpu.memory_space<vmem>>, %arg14: memref<256x256xf32, #tpu.memory_space<vmem>>, %arg15: memref<2x!tpu.dma_semaphore, #tpu.memory_space<semaphore_mem>>) attributes {dimension_semantics = [#tpu.dimension_semantics<arbitrary>], iteration_bounds = array<i64: 1>, scalar_prefetch = 0 : i64, scratch_operands = 3 : i64, tpu.core_type = #tpu.core_type<tc>, window_params = [{pipeline_mode = #tpu.pipeline_mode<synchronous>, transform_indices = @transform_0, window_bounds = array<i64: 112, 32>}, {pipeline_mode = #tpu.pipeline_mode<synchronous>, transform_indices = @transform_1, window_bounds = array<i64: 32, 128>}, {pipeline_mode = #tpu.pipeline_mode<synchronous>, transform_indices = @transform_2, window_bounds = array<i64: 1, 128>}, {}, {pipeline_mode = #tpu.pipeline_mode<synchronous>, transform_indices = @transform_4, window_bounds = array<i64: 1, 256>}, {}, {pipeline_mode = #tpu.pipeline_mode<synchronous>, transform_indices = @transform_6, window_bounds = array<i64: 1, 256>}, {pipeline_mode = #tpu.pipeline_mode<synchronous>, transform_indices = @transform_7, window_bounds = array<i64: 256, 128>}, {pipeline_mode = #tpu.pipeline_mode<synchronous>, transform_indices = @transform_8, window_bounds = array<i64: 1, 128>}, {pipeline_mode = #tpu.pipeline_mode<synchronous>, transform_indices = @transform_9, window_bounds = array<i64: 128, 10>}, {pipeline_mode = #tpu.pipeline_mode<synchronous>, transform_indices = @transform_10, window_bounds = array<i64: 1, 10>}, {pipeline_mode = #tpu.pipeline_mode<synchronous>, transform_indices = @transform_11, window_bounds = array<i64: 2, 10>}]} {
    %c0_i32 = arith.constant 0 : i32
    %0 = tpu.memref_slice %arg15[%c0_i32] : memref<2x!tpu.dma_semaphore, #tpu.memory_space<semaphore_mem>> -> memref<1x!tpu.dma_semaphore, #tpu.memory_space<semaphore_mem>>
    %1 = tpu.memref_squeeze %0 : memref<1x!tpu.dma_semaphore, #tpu.memory_space<semaphore_mem>> -> memref<!tpu.dma_semaphore, #tpu.memory_space<semaphore_mem>>
    tpu.enqueue_dma source(%arg4 : memref<1024x256xf32, #tpu.memory_space<any>>) target(%arg13 : memref<1024x256xf32, #tpu.memory_space<vmem>>) target_semaphore(%1 : memref<!tpu.dma_semaphore, #tpu.memory_space<semaphore_mem>>)
    %c1_i32 = arith.constant 1 : i32
    %2 = tpu.memref_slice %arg15[%c1_i32] : memref<2x!tpu.dma_semaphore, #tpu.memory_space<semaphore_mem>> -> memref<1x!tpu.dma_semaphore, #tpu.memory_space<semaphore_mem>>
    %3 = tpu.memref_squeeze %2 : memref<1x!tpu.dma_semaphore, #tpu.memory_space<semaphore_mem>> -> memref<!tpu.dma_semaphore, #tpu.memory_space<semaphore_mem>>
    tpu.enqueue_dma source(%arg6 : memref<256x256xf32, #tpu.memory_space<any>>) target(%arg14 : memref<256x256xf32, #tpu.memory_space<vmem>>) target_semaphore(%3 : memref<!tpu.dma_semaphore, #tpu.memory_space<semaphore_mem>>)
    %c0 = arith.constant 0 : index
    %c0_0 = arith.constant 0 : index
    %4 = vector.load %arg1[%c0, %c0_0] : memref<112x32xf32, #tpu.memory_space<vmem>>, vector<112x32xf32>
    %c0_1 = arith.constant 0 : index
    %c0_2 = arith.constant 0 : index
    %5 = vector.load %arg2[%c0_1, %c0_2] : memref<32x128xf32, #tpu.memory_space<vmem>>, vector<32x128xf32>
    %cst = arith.constant dense<0.000000e+00> : vector<112x128xf32>
    %6 = tpu.matmul %4, %5, %cst {dimension_numbers = #tpu.dot_dimension_numbers<[1], [0], [0], [1], [0, 0, 1, 1], [], []>} : vector<112x32xf32>, vector<32x128xf32>, vector<112x128xf32> -> vector<112x128xf32>
    %7 = vector.extract_strided_slice %6 {offsets = [0, 0], sizes = [28, 128], strides = [1, 1]} : vector<112x128xf32> to vector<28x128xf32>
    %8 = vector.extract_strided_slice %6 {offsets = [28, 0], sizes = [28, 128], strides = [1, 1]} : vector<112x128xf32> to vector<28x128xf32>
    %9 = arith.maximumf %7, %8 : vector<28x128xf32>
    %10 = vector.extract_strided_slice %6 {offsets = [56, 0], sizes = [28, 128], strides = [1, 1]} : vector<112x128xf32> to vector<28x128xf32>
    %11 = arith.maximumf %9, %10 : vector<28x128xf32>
    %12 = vector.extract_strided_slice %6 {offsets = [84, 0], sizes = [28, 128], strides = [1, 1]} : vector<112x128xf32> to vector<28x128xf32>
    %13 = arith.maximumf %11, %12 : vector<28x128xf32>
    %c0_3 = arith.constant 0 : index
    %c0_4 = arith.constant 0 : index
    %14 = vector.load %arg3[%c0_3, %c0_4] : memref<1x128xf32, #tpu.memory_space<vmem>>, vector<1x128xf32>
    %15 = vector.broadcast %14 : vector<1x128xf32> to vector<28x128xf32>
    %16 = arith.addf %13, %15 : vector<28x128xf32>
    %cst_5 = arith.constant 0.000000e+00 : f32
    %17 = vector.broadcast %cst_5 : f32 to vector<28x128xf32>
    %18 = arith.maximumf %16, %17 : vector<28x128xf32>
    %19 = vector.extract_strided_slice %18 {offsets = [0, 0], sizes = [4, 128], strides = [1, 1]} : vector<28x128xf32> to vector<4x128xf32>
    %20 = vector.extract_strided_slice %18 {offsets = [1, 0], sizes = [4, 128], strides = [1, 1]} : vector<28x128xf32> to vector<4x128xf32>
    %21 = vector.extract_strided_slice %18 {offsets = [2, 0], sizes = [4, 128], strides = [1, 1]} : vector<28x128xf32> to vector<4x128xf32>
    %22 = vector.extract_strided_slice %18 {offsets = [3, 0], sizes = [4, 128], strides = [1, 1]} : vector<28x128xf32> to vector<4x128xf32>
    %23 = vector.extract_strided_slice %18 {offsets = [4, 0], sizes = [4, 128], strides = [1, 1]} : vector<28x128xf32> to vector<4x128xf32>
    %24 = vector.extract_strided_slice %18 {offsets = [5, 0], sizes = [4, 128], strides = [1, 1]} : vector<28x128xf32> to vector<4x128xf32>
    %25 = vector.extract_strided_slice %18 {offsets = [6, 0], sizes = [4, 128], strides = [1, 1]} : vector<28x128xf32> to vector<4x128xf32>
    %26 = vector.extract_strided_slice %18 {offsets = [7, 0], sizes = [4, 128], strides = [1, 1]} : vector<28x128xf32> to vector<4x128xf32>
    %27 = tpu.concatenate %19, %20, %21, %22, %23, %24, %25, %26 in 1 : vector<4x128xf32>, vector<4x128xf32>, vector<4x128xf32>, vector<4x128xf32>, vector<4x128xf32>, vector<4x128xf32>, vector<4x128xf32>, vector<4x128xf32> -> vector<4x1024xf32>
    %28 = vector.extract_strided_slice %18 {offsets = [14, 0], sizes = [4, 128], strides = [1, 1]} : vector<28x128xf32> to vector<4x128xf32>
    %29 = vector.extract_strided_slice %18 {offsets = [15, 0], sizes = [4, 128], strides = [1, 1]} : vector<28x128xf32> to vector<4x128xf32>
    %30 = vector.extract_strided_slice %18 {offsets = [16, 0], sizes = [4, 128], strides = [1, 1]} : vector<28x128xf32> to vector<4x128xf32>
    %31 = vector.extract_strided_slice %18 {offsets = [17, 0], sizes = [4, 128], strides = [1, 1]} : vector<28x128xf32> to vector<4x128xf32>
    %32 = vector.extract_strided_slice %18 {offsets = [18, 0], sizes = [4, 128], strides = [1, 1]} : vector<28x128xf32> to vector<4x128xf32>
    %33 = vector.extract_strided_slice %18 {offsets = [19, 0], sizes = [4, 128], strides = [1, 1]} : vector<28x128xf32> to vector<4x128xf32>
    %34 = vector.extract_strided_slice %18 {offsets = [20, 0], sizes = [4, 128], strides = [1, 1]} : vector<28x128xf32> to vector<4x128xf32>
    %35 = vector.extract_strided_slice %18 {offsets = [21, 0], sizes = [4, 128], strides = [1, 1]} : vector<28x128xf32> to vector<4x128xf32>
    %36 = tpu.concatenate %28, %29, %30, %31, %32, %33, %34, %35 in 1 : vector<4x128xf32>, vector<4x128xf32>, vector<4x128xf32>, vector<4x128xf32>, vector<4x128xf32>, vector<4x128xf32>, vector<4x128xf32>, vector<4x128xf32> -> vector<4x1024xf32>
    %37 = tpu.concatenate %27, %36 in 0 : vector<4x1024xf32>, vector<4x1024xf32> -> vector<8x1024xf32>
    %c0_i32_6 = arith.constant 0 : i32
    %38 = tpu.memref_slice %arg15[%c0_i32_6] : memref<2x!tpu.dma_semaphore, #tpu.memory_space<semaphore_mem>> -> memref<1x!tpu.dma_semaphore, #tpu.memory_space<semaphore_mem>>
    %39 = tpu.memref_squeeze %38 : memref<1x!tpu.dma_semaphore, #tpu.memory_space<semaphore_mem>> -> memref<!tpu.dma_semaphore, #tpu.memory_space<semaphore_mem>>
    tpu.wait_dma2 semaphore(%39 : memref<!tpu.dma_semaphore, #tpu.memory_space<semaphore_mem>>) src(%arg4 : memref<1024x256xf32, #tpu.memory_space<any>>) dst(%arg13 : memref<1024x256xf32, #tpu.memory_space<vmem>>)
    %c0_7 = arith.constant 0 : index
    %c0_8 = arith.constant 0 : index
    %40 = vector.load %arg13[%c0_7, %c0_8] : memref<1024x256xf32, #tpu.memory_space<vmem>>, vector<1024x256xf32>
    %cst_9 = arith.constant dense<0.000000e+00> : vector<8x256xf32>
    %41 = tpu.matmul %37, %40, %cst_9 {dimension_numbers = #tpu.dot_dimension_numbers<[1], [0], [0], [1], [0, 0, 1, 1], [], []>} : vector<8x1024xf32>, vector<1024x256xf32>, vector<8x256xf32> -> vector<8x256xf32>
    %42 = vector.extract_strided_slice %41 {offsets = [0, 0], sizes = [4, 256], strides = [1, 1]} : vector<8x256xf32> to vector<4x256xf32>
    %cst_10 = arith.constant dense<0xFF800000> : vector<256xf32>
    %43 = vector.multi_reduction <maximumf>, %42, %cst_10 [0] : vector<4x256xf32> to vector<256xf32>
    %44 = vector.shape_cast %43 : vector<256xf32> to vector<1x256xf32>
    %45 = vector.extract_strided_slice %41 {offsets = [4, 0], sizes = [4, 256], strides = [1, 1]} : vector<8x256xf32> to vector<4x256xf32>
    %cst_11 = arith.constant dense<0xFF800000> : vector<256xf32>
    %46 = vector.multi_reduction <maximumf>, %45, %cst_11 [0] : vector<4x256xf32> to vector<256xf32>
    %47 = vector.shape_cast %46 : vector<256xf32> to vector<1x256xf32>
    %48 = tpu.concatenate %44, %47 in 0 : vector<1x256xf32>, vector<1x256xf32> -> vector<2x256xf32>
    %c0_12 = arith.constant 0 : index
    %c0_13 = arith.constant 0 : index
    %49 = vector.load %arg5[%c0_12, %c0_13] : memref<1x256xf32, #tpu.memory_space<vmem>>, vector<1x256xf32>
    %50 = vector.broadcast %49 : vector<1x256xf32> to vector<2x256xf32>
    %51 = arith.addf %48, %50 : vector<2x256xf32>
    %cst_14 = arith.constant 0.000000e+00 : f32
    %52 = vector.broadcast %cst_14 : f32 to vector<2x256xf32>
    %53 = arith.maximumf %51, %52 : vector<2x256xf32>
    %c1_i32_15 = arith.constant 1 : i32
    %54 = tpu.memref_slice %arg15[%c1_i32_15] : memref<2x!tpu.dma_semaphore, #tpu.memory_space<semaphore_mem>> -> memref<1x!tpu.dma_semaphore, #tpu.memory_space<semaphore_mem>>
    %55 = tpu.memref_squeeze %54 : memref<1x!tpu.dma_semaphore, #tpu.memory_space<semaphore_mem>> -> memref<!tpu.dma_semaphore, #tpu.memory_space<semaphore_mem>>
    tpu.wait_dma2 semaphore(%55 : memref<!tpu.dma_semaphore, #tpu.memory_space<semaphore_mem>>) src(%arg6 : memref<256x256xf32, #tpu.memory_space<any>>) dst(%arg14 : memref<256x256xf32, #tpu.memory_space<vmem>>)
    %c0_16 = arith.constant 0 : index
    %c0_17 = arith.constant 0 : index
    %56 = vector.load %arg14[%c0_16, %c0_17] : memref<256x256xf32, #tpu.memory_space<vmem>>, vector<256x256xf32>
    %cst_18 = arith.constant dense<0.000000e+00> : vector<2x256xf32>
    %57 = tpu.matmul %53, %56, %cst_18 {dimension_numbers = #tpu.dot_dimension_numbers<[1], [0], [0], [1], [0, 0, 1, 1], [], []>} : vector<2x256xf32>, vector<256x256xf32>, vector<2x256xf32> -> vector<2x256xf32>
    %c0_19 = arith.constant 0 : index
    %c0_20 = arith.constant 0 : index
    %58 = vector.load %arg7[%c0_19, %c0_20] : memref<1x256xf32, #tpu.memory_space<vmem>>, vector<1x256xf32>
    %59 = vector.broadcast %58 : vector<1x256xf32> to vector<2x256xf32>
    %60 = arith.addf %57, %59 : vector<2x256xf32>
    %cst_21 = arith.constant 0.000000e+00 : f32
    %61 = vector.broadcast %cst_21 : f32 to vector<2x256xf32>
    %62 = arith.maximumf %60, %61 : vector<2x256xf32>
    %c0_22 = arith.constant 0 : index
    %c0_23 = arith.constant 0 : index
    %63 = vector.load %arg8[%c0_22, %c0_23] : memref<256x128xf32, #tpu.memory_space<vmem>>, vector<256x128xf32>
    %cst_24 = arith.constant dense<0.000000e+00> : vector<2x128xf32>
    %64 = tpu.matmul %62, %63, %cst_24 {dimension_numbers = #tpu.dot_dimension_numbers<[1], [0], [0], [1], [0, 0, 1, 1], [], []>} : vector<2x256xf32>, vector<256x128xf32>, vector<2x128xf32> -> vector<2x128xf32>
    %c0_25 = arith.constant 0 : index
    %c0_26 = arith.constant 0 : index
    %65 = vector.load %arg9[%c0_25, %c0_26] : memref<1x128xf32, #tpu.memory_space<vmem>>, vector<1x128xf32>
    %66 = vector.broadcast %65 : vector<1x128xf32> to vector<2x128xf32>
    %67 = arith.addf %64, %66 : vector<2x128xf32>
    %cst_27 = arith.constant 0.000000e+00 : f32
    %68 = vector.broadcast %cst_27 : f32 to vector<2x128xf32>
    %69 = arith.maximumf %67, %68 : vector<2x128xf32>
    %c0_28 = arith.constant 0 : index
    %c0_29 = arith.constant 0 : index
    %70 = vector.load %arg10[%c0_28, %c0_29] : memref<128x10xf32, #tpu.memory_space<vmem>>, vector<128x10xf32>
    %cst_30 = arith.constant dense<0.000000e+00> : vector<2x10xf32>
    %71 = tpu.matmul %69, %70, %cst_30 {dimension_numbers = #tpu.dot_dimension_numbers<[1], [0], [0], [1], [0, 0, 1, 1], [], []>} : vector<2x128xf32>, vector<128x10xf32>, vector<2x10xf32> -> vector<2x10xf32>
    %c0_31 = arith.constant 0 : index
    %c0_32 = arith.constant 0 : index
    %72 = vector.load %arg11[%c0_31, %c0_32] : memref<1x10xf32, #tpu.memory_space<vmem>>, vector<1x10xf32>
    %73 = vector.broadcast %72 : vector<1x10xf32> to vector<2x10xf32>
    %74 = arith.addf %71, %73 : vector<2x10xf32>
    %cst_33 = arith.constant 0.000000e+00 : f32
    %75 = vector.broadcast %cst_33 : f32 to vector<2x10xf32>
    %76 = arith.maximumf %74, %75 : vector<2x10xf32>
    %cst_34 = arith.constant dense<0xFF800000> : vector<2xf32>
    %77 = vector.multi_reduction <maximumf>, %76, %cst_34 [1] : vector<2x10xf32> to vector<2xf32>
    %78 = vector.shape_cast %77 : vector<2xf32> to vector<2x1xf32>
    %79 = vector.broadcast %78 : vector<2x1xf32> to vector<2x10xf32>
    %80 = arith.subf %76, %79 : vector<2x10xf32>
    %81 = math.exp %80 : vector<2x10xf32>
    %cst_35 = arith.constant dense<0.000000e+00> : vector<2xf32>
    %82 = vector.multi_reduction <add>, %81, %cst_35 [1] : vector<2x10xf32> to vector<2xf32>
    %83 = vector.shape_cast %82 : vector<2xf32> to vector<2x1xf32>
    %84 = vector.broadcast %83 : vector<2x1xf32> to vector<2x10xf32>
    %85 = arith.divf %81, %84 : vector<2x10xf32>
    %c0_36 = arith.constant 0 : index
    %c0_37 = arith.constant 0 : index
    %86 = vector.load %arg12[%c0_36, %c0_37] : memref<2x10xf32, #tpu.memory_space<vmem>>, vector<2x10xf32>
    tpu.vector_store %arg12[%c0_36, %c0_37], %85 {strides = array<i32>} : memref<2x10xf32, #tpu.memory_space<vmem>>, vector<2x10xf32>,
    return
  }
  func.func @transform_0(%arg0: i32) -> (i32, i32) {
    %c0_i32 = arith.constant 0 : i32
    %c0_i32_0 = arith.constant 0 : i32
    %c0_i32_1 = arith.constant 0 : i32
    return %c0_i32, %c0_i32_0 : i32, i32
  }
  func.func @transform_1(%arg0: i32) -> (i32, i32) {
    %c0_i32 = arith.constant 0 : i32
    %c0_i32_0 = arith.constant 0 : i32
    %c0_i32_1 = arith.constant 0 : i32
    return %c0_i32, %c0_i32_0 : i32, i32
  }
  func.func @transform_2(%arg0: i32) -> (i32, i32) {
    %c0_i32 = arith.constant 0 : i32
    %c0_i32_0 = arith.constant 0 : i32
    %c0_i32_1 = arith.constant 0 : i32
    return %c0_i32, %c0_i32_0 : i32, i32
  }
  func.func @transform_4(%arg0: i32) -> (i32, i32) {
    %c0_i32 = arith.constant 0 : i32
    %c0_i32_0 = arith.constant 0 : i32
    %c0_i32_1 = arith.constant 0 : i32
    return %c0_i32, %c0_i32_0 : i32, i32
  }
  func.func @transform_6(%arg0: i32) -> (i32, i32) {
    %c0_i32 = arith.constant 0 : i32
    %c0_i32_0 = arith.constant 0 : i32
    %c0_i32_1 = arith.constant 0 : i32
    return %c0_i32, %c0_i32_0 : i32, i32
  }
  func.func @transform_7(%arg0: i32) -> (i32, i32) {
    %c0_i32 = arith.constant 0 : i32
    %c0_i32_0 = arith.constant 0 : i32
    %c0_i32_1 = arith.constant 0 : i32
    return %c0_i32, %c0_i32_0 : i32, i32
  }
  func.func @transform_8(%arg0: i32) -> (i32, i32) {
    %c0_i32 = arith.constant 0 : i32
    %c0_i32_0 = arith.constant 0 : i32
    %c0_i32_1 = arith.constant 0 : i32
    return %c0_i32, %c0_i32_0 : i32, i32
  }
  func.func @transform_9(%arg0: i32) -> (i32, i32) {
    %c0_i32 = arith.constant 0 : i32
    %c0_i32_0 = arith.constant 0 : i32
    %c0_i32_1 = arith.constant 0 : i32
    return %c0_i32, %c0_i32_0 : i32, i32
  }
  func.func @transform_10(%arg0: i32) -> (i32, i32) {
    %c0_i32 = arith.constant 0 : i32
    %c0_i32_0 = arith.constant 0 : i32
    %c0_i32_1 = arith.constant 0 : i32
    return %c0_i32, %c0_i32_0 : i32, i32
  }
  func.func @transform_11(%arg0: i32) -> (i32, i32) {
    %c0_i32 = arith.constant 0 : i32
    %c0_i32_0 = arith.constant 0 : i32
    %c0_i32_1 = arith.constant 0 : i32
    return %c0_i32, %c0_i32_0 : i32, i32
  }
}

</mosaic_0001>

<bundles_post_ra>
// kernel: cnn_forward.1
= control target key start
LH: loop header
LB: loop body
LE: loop exit
PB: predicated region body
PF: predicated region fallthrough
CT: control target
= control target key end

     0   :  { %16 = vsyncpa [#allocation6], 0  ;;  %s4958_s0 = inlined_call_operand.vmem [shape: f32[112,32], index: 0, kind: input, shape index: {}]   ;;  %s4959_s1 = inlined_call_operand.vmem [shape: f32[32,128], index: 1, kind: input, shape index: {}]   ;;  %s4960_s2 = inlined_call_operand.vmem [shape: f32[1,128], index: 2, kind: input, shape index: {}]   ;;  %s4961_s3 = inlined_call_operand.vmem [shape: f32[1024,256], index: 3, kind: input, shape index: {}]   ;;  %s4962_s4 = inlined_call_operand.vmem [shape: f32[1,256], index: 4, kind: input, shape index: {}]   ;;  %s4963_s5 = inlined_call_operand.vmem [shape: f32[256,256], index: 5, kind: input, shape index: {}]   ;;  %s4964_s6 = inlined_call_operand.vmem [shape: f32[1,256], index: 6, kind: input, shape index: {}]   ;;  %s4965_s7 = inlined_call_operand.vmem [shape: f32[256,128], index: 7, kind: input, shape index: {}]   ;;  %s4966_s8 = inlined_call_operand.vmem [shape: f32[1,128], index: 8, kind: input, shape index: {}]   ;;  %s4967_s9 = inlined_call_operand.vmem [shape: f32[128,10], index: 9, kind: input, shape index: {}]   ;;  %s4968_s10 = inlined_call_operand.vmem [shape: f32[1,10], index: 10, kind: input, shape index: {}]   ;;  %s4969_s11 = inlined_call_operand.hbm [shape: f32[2,10], index: 11, kind: output, shape index: {}]  }
   0x1   :  { %v2738_v0 = vld [vmem:[%s4961_s3] sm:$0xff]  ;;  %v2743_v1 = vld [vmem:[%s4961_s3 + $0x8] sm:$0xff]  ;;  %v2748_v2 = vld [vmem:[%s4961_s3 + $0x10] sm:$0xff] }
   0x2   :  { %v2753_v3 = vld [vmem:[%s4961_s3 + $0x18] sm:$0xff]  ;;  %v2758_v4 = vld [vmem:[%s4961_s3 + $0x20] sm:$0xff]  ;;  %v2763_v5 = vld [vmem:[%s4961_s3 + $0x28] sm:$0xff] }
   0x3   :  { %v2768_v6 = vld [vmem:[%s4961_s3 + $0x30] sm:$0xff]  ;;  %v2773_v7 = vld [vmem:[%s4961_s3 + $0x38] sm:$0xff]  ;;  %v2778_v8 = vld [vmem:[%s4961_s3 + $0x40] sm:$0xff] }
   0x4   :  { %4970 = vst [vmem:[#allocation12_spill] sm:$0xff] %v2778_v8  ;;  %v2783_v9 = vld [vmem:[%s4961_s3 + $0x48] sm:$0xff]  ;;  %v2788_v10 = vld [vmem:[%s4961_s3 + $0x50] sm:$0xff]  ;;  %v2793_v11 = vld [vmem:[%s4961_s3 + $0x58] sm:$0xff] }
   0x5   :  { %4971 = vst [vmem:[#allocation13_spill] sm:$0xff] %v2783_v9  ;;  %4972 = vst [vmem:[#allocation14_spill] sm:$0xff] %v2788_v10  ;;  %v2798_v12 = vld [vmem:[%s4961_s3 + $0x60] sm:$0xff]  ;;  %v2803_v13 = vld [vmem:[%s4961_s3 + $0x68] sm:$0xff] }
   0x6   :  { %4973 = vst [vmem:[#allocation15_spill] sm:$0xff] %v2793_v11  ;;  %4974 = vst [vmem:[#allocation16_spill] sm:$0xff] %v2798_v12  ;;  %v2808_v14 = vld [vmem:[%s4961_s3 + $0x70] sm:$0xff]  ;;  %v2813_v15 = vld [vmem:[%s4961_s3 + $0x78] sm:$0xff] }
   0x7   :  { %4975 = vst [vmem:[#allocation17_spill] sm:$0xff] %v2803_v13  ;;  %4976 = vst [vmem:[#allocation18_spill] sm:$0xff] %v2808_v14  ;;  %v2818_v16 = vld [vmem:[%s4961_s3 + $0x80] sm:$0xff]  ;;  %v2823_v17 = vld [vmem:[%s4961_s3 + $0x88] sm:$0xff] }
   0x8   :  { %4977 = vst [vmem:[#allocation19_spill] sm:$0xff] %v2813_v15  ;;  %4978 = vst [vmem:[#allocation20_spill] sm:$0xff] %v2818_v16  ;;  %v2828_v18 = vld [vmem:[%s4961_s3 + $0x90] sm:$0xff]  ;;  %v2833_v19 = vld [vmem:[%s4961_s3 + $0x98] sm:$0xff] }
   0x9   :  { %4979 = vst [vmem:[#allocation21_spill] sm:$0xff] %v2823_v17  ;;  %4980 = vst [vmem:[#allocation22_spill] sm:$0xff] %v2828_v18  ;;  %v2838_v20 = vld [vmem:[%s4961_s3 + $0xa0] sm:$0xff]  ;;  %v2843_v21 = vld [vmem:[%s4961_s3 + $0xa8] sm:$0xff] }
   0xa   :  { %4981 = vst [vmem:[#allocation23_spill] sm:$0xff] %v2833_v19  ;;  %4982 = vst [vmem:[#allocation24_spill] sm:$0xff] %v2838_v20  ;;  %v2848_v22 = vld [vmem:[%s4961_s3 + $0xb0] sm:$0xff]  ;;  %v2853_v23 = vld [vmem:[%s4961_s3 + $0xb8] sm:$0xff] }
   0xb   :  { %4983 = vst [vmem:[#allocation25_spill] sm:$0xff] %v2843_v21  ;;  %4984 = vst [vmem:[#allocation26_spill] sm:$0xff] %v2848_v22  ;;  %v2858_v24 = vld [vmem:[%s4961_s3 + $0xc0] sm:$0xff]  ;;  %v2863_v25 = vld [vmem:[%s4961_s3 + $0xc8] sm:$0xff] }
   0xc   :  { %4985 = vst [vmem:[#allocation27_spill] sm:$0xff] %v2853_v23  ;;  %4986 = vst [vmem:[#allocation28_spill] sm:$0xff] %v2858_v24  ;;  %v2868_v26 = vld [vmem:[%s4961_s3 + $0xd0] sm:$0xff]  ;;  %v2873_v27 = vld [vmem:[%s4961_s3 + $0xd8] sm:$0xff] }
   0xd   :  { %4987 = vst [vmem:[#allocation29_spill] sm:$0xff] %v2863_v25  ;;  %4988 = vst [vmem:[#allocation30_spill] sm:$0xff] %v2868_v26  ;;  %v2878_v28 = vld [vmem:[%s4961_s3 + $0xe0] sm:$0xff]  ;;  %v2883_v29 = vld [vmem:[%s4961_s3 + $0xe8] sm:$0xff] }
   0xe   :  { %4989 = vst [vmem:[#allocation31_spill] sm:$0xff] %v2873_v27  ;;  %4990 = vst [vmem:[#allocation32_spill] sm:$0xff] %v2878_v28  ;;  %v2888_v30 = vld [vmem:[%s4961_s3 + $0xf0] sm:$0xff]  ;;  %v2893_v31 = vld [vmem:[%s4961_s3 + $0xf8] sm:$0xff] }
   0xf   :  { %4991 = vst [vmem:[#allocation33_spill] sm:$0xff] %v2883_v29  ;;  %4992 = vst [vmem:[#allocation34_spill] sm:$0xff] %v2888_v30  ;;  %v2898_v32 = vld [vmem:[%s4961_s3 + $0x100] sm:$0xff]  ;;  %v2903_v33 = vld [vmem:[%s4961_s3 + $0x108] sm:$0xff] }
  0x10   :  { %4993 = vst [vmem:[#allocation35_spill] sm:$0xff] %v2893_v31  ;;  %4994 = vst [vmem:[#allocation36_spill] sm:$0xff] %v2898_v32  ;;  %v2908_v34 = vld [vmem:[%s4961_s3 + $0x110] sm:$0xff]  ;;  %v2913_v35 = vld [vmem:[%s4961_s3 + $0x118] sm:$0xff] }
  0x11   :  { %4995 = vst [vmem:[#allocation37_spill] sm:$0xff] %v2903_v33  ;;  %4996 = vst [vmem:[#allocation38_spill] sm:$0xff] %v2908_v34  ;;  %v2918_v36 = vld [vmem:[%s4961_s3 + $0x120] sm:$0xff]  ;;  %v2923_v37 = vld [vmem:[%s4961_s3 + $0x128] sm:$0xff] }
  0x12   :  { %4997 = vst [vmem:[#allocation39_spill] sm:$0xff] %v2913_v35  ;;  %4998 = vst [vmem:[#allocation40_spill] sm:$0xff] %v2918_v36  ;;  %v2928_v38 = vld [vmem:[%s4961_s3 + $0x130] sm:$0xff]  ;;  %v2933_v39 = vld [vmem:[%s4961_s3 + $0x138] sm:$0xff] }
  0x13   :  { %4999 = vst [vmem:[#allocation41_spill] sm:$0xff] %v2923_v37  ;;  %5000 = vst [vmem:[#allocation42_spill] sm:$0xff] %v2928_v38  ;;  %v2938_v40 = vld [vmem:[%s4961_s3 + $0x140] sm:$0xff]  ;;  %v2943_v41 = vld [vmem:[%s4961_s3 + $0x148] sm:$0xff] }
  0x14   :  { %5001 = vst [vmem:[#allocation43_spill] sm:$0xff] %v2933_v39  ;;  %5002 = vst [vmem:[#allocation44_spill] sm:$0xff] %v2938_v40  ;;  %v2948_v42 = vld [vmem:[%s4961_s3 + $0x150] sm:$0xff]  ;;  %v2953_v43 = vld [vmem:[%s4961_s3 + $0x158] sm:$0xff] }
  0x15   :  { %5003 = vst [vmem:[#allocation45_spill] sm:$0xff] %v2943_v41  ;;  %5004 = vst [vmem:[#allocation46_spill] sm:$0xff] %v2948_v42  ;;  %v2958_v44 = vld [vmem:[%s4961_s3 + $0x160] sm:$0xff]  ;;  %v2963_v45 = vld [vmem:[%s4961_s3 + $0x168] sm:$0xff] }
  0x16   :  { %5005 = vst [vmem:[#allocation47_spill] sm:$0xff] %v2953_v43  ;;  %5006 = vst [vmem:[#allocation48_spill] sm:$0xff] %v2958_v44  ;;  %v2968_v46 = vld [vmem:[%s4961_s3 + $0x170] sm:$0xff]  ;;  %v2973_v47 = vld [vmem:[%s4961_s3 + $0x178] sm:$0xff] }
  0x17   :  { %5007 = vst [vmem:[#allocation49_spill] sm:$0xff] %v2963_v45  ;;  %5008 = vst [vmem:[#allocation50_spill] sm:$0xff] %v2968_v46  ;;  %v2978_v48 = vld [vmem:[%s4961_s3 + $0x180] sm:$0xff]  ;;  %v2983_v49 = vld [vmem:[%s4961_s3 + $0x188] sm:$0xff] }
  0x18   :  { %5009 = vst [vmem:[#allocation51_spill] sm:$0xff] %v2973_v47  ;;  %5010 = vst [vmem:[#allocation52_spill] sm:$0xff] %v2978_v48  ;;  %v2988_v50 = vld [vmem:[%s4961_s3 + $0x190] sm:$0xff]  ;;  %v2993_v51 = vld [vmem:[%s4961_s3 + $0x198] sm:$0xff] }
  0x19   :  { %5011 = vst [vmem:[#allocation53_spill] sm:$0xff] %v2983_v49  ;;  %5012 = vst [vmem:[#allocation54_spill] sm:$0xff] %v2988_v50  ;;  %v2998_v52 = vld [vmem:[%s4961_s3 + $0x1a0] sm:$0xff]  ;;  %v3003_v53 = vld [vmem:[%s4961_s3 + $0x1a8] sm:$0xff] }
  0x1a   :  { %5013 = vst [vmem:[#allocation55_spill] sm:$0xff] %v2993_v51  ;;  %5014 = vst [vmem:[#allocation56_spill] sm:$0xff] %v2998_v52  ;;  %v3008_v54 = vld [vmem:[%s4961_s3 + $0x1b0] sm:$0xff]  ;;  %v3013_v55 = vld [vmem:[%s4961_s3 + $0x1b8] sm:$0xff] }
  0x1b   :  { %5015 = vst [vmem:[#allocation57_spill] sm:$0xff] %v3003_v53  ;;  %5016 = vst [vmem:[#allocation58_spill] sm:$0xff] %v3008_v54  ;;  %v3018_v56 = vld [vmem:[%s4961_s3 + $0x1c0] sm:$0xff]  ;;  %v3023_v57 = vld [vmem:[%s4961_s3 + $0x1c8] sm:$0xff] }
  0x1c   :  { %5017 = vst [vmem:[#allocation59_spill] sm:$0xff] %v3013_v55  ;;  %5018 = vst [vmem:[#allocation60_spill] sm:$0xff] %v3018_v56  ;;  %v3028_v58 = vld [vmem:[%s4961_s3 + $0x1d0] sm:$0xff]  ;;  %v3033_v59 = vld [vmem:[%s4961_s3 + $0x1d8] sm:$0xff] }
  0x1d   :  { %5019 = vst [vmem:[#allocation61_spill] sm:$0xff] %v3023_v57  ;;  %5020 = vst [vmem:[#allocation62_spill] sm:$0xff] %v3028_v58  ;;  %v3038_v60 = vld [vmem:[%s4961_s3 + $0x1e0] sm:$0xff]  ;;  %v3043_v61 = vld [vmem:[%s4961_s3 + $0x1e8] sm:$0xff] }
  0x1e   :  { %5021 = vst [vmem:[#allocation63_spill] sm:$0xff] %v3033_v59  ;;  %5022 = vst [vmem:[#allocation64_spill] sm:$0xff] %v3038_v60  ;;  %v3048_v62 = vld [vmem:[%s4961_s3 + $0x1f0] sm:$0xff]  ;;  %v3053_v63 = vld [vmem:[%s4961_s3 + $0x1f8] sm:$0xff] }
  0x1f   :  { %5023 = vst [vmem:[#allocation65_spill] sm:$0xff] %v3043_v61  ;;  %5024 = vst [vmem:[#allocation66_spill] sm:$0xff] %v3048_v62  ;;  %v3058_v58 = vld [vmem:[%s4961_s3 + $0x200] sm:$0xff]  ;;  %v3063_v60 = vld [vmem:[%s4961_s3 + $0x208] sm:$0xff] }
  0x20   :  { %5025 = vst [vmem:[#allocation67_spill] sm:$0xff] %v3053_v63  ;;  %v3068_v61 = vld [vmem:[%s4961_s3 + $0x210] sm:$0xff]  ;;  %v3073_v62 = vld [vmem:[%s4961_s3 + $0x218] sm:$0xff]  ;;  %v3078_v63 = vld [vmem:[%s4961_s3 + $0x220] sm:$0xff] }
  0x21   :  { %v3083_v56 = vld [vmem:[%s4961_s3 + $0x228] sm:$0xff]  ;;  %v3088_v59 = vld [vmem:[%s4961_s3 + $0x230] sm:$0xff]  ;;  %v3093_v57 = vld [vmem:[%s4961_s3 + $0x238] sm:$0xff] }
  0x22   :  { %v3098_v54 = vld [vmem:[%s4961_s3 + $0x240] sm:$0xff]  ;;  %v3103_v52 = vld [vmem:[%s4961_s3 + $0x248] sm:$0xff]  ;;  %v3108_v55 = vld [vmem:[%s4961_s3 + $0x250] sm:$0xff] }
  0x23   :  { %v3113_v53 = vld [vmem:[%s4961_s3 + $0x258] sm:$0xff]  ;;  %v3118_v50 = vld [vmem:[%s4961_s3 + $0x260] sm:$0xff]  ;;  %v3123_v48 = vld [vmem:[%s4961_s3 + $0x268] sm:$0xff] }
  0x24   :  { %v3128_v51 = vld [vmem:[%s4961_s3 + $0x270] sm:$0xff]  ;;  %v3133_v49 = vld [vmem:[%s4961_s3 + $0x278] sm:$0xff]  ;;  %v3138_v46 = vld [vmem:[%s4961_s3 + $0x280] sm:$0xff] }
  0x25   :  { %v3143_v44 = vld [vmem:[%s4961_s3 + $0x288] sm:$0xff]  ;;  %v3148_v47 = vld [vmem:[%s4961_s3 + $0x290] sm:$0xff]  ;;  %v3153_v45 = vld [vmem:[%s4961_s3 + $0x298] sm:$0xff] }
  0x26   :  { %v3158_v42 = vld [vmem:[%s4961_s3 + $0x2a0] sm:$0xff]  ;;  %v3163_v40 = vld [vmem:[%s4961_s3 + $0x2a8] sm:$0xff]  ;;  %v3168_v43 = vld [vmem:[%s4961_s3 + $0x2b0] sm:$0xff] }
  0x27   :  { %v3173_v41 = vld [vmem:[%s4961_s3 + $0x2b8] sm:$0xff]  ;;  %v3178_v38 = vld [vmem:[%s4961_s3 + $0x2c0] sm:$0xff]  ;;  %v3183_v36 = vld [vmem:[%s4961_s3 + $0x2c8] sm:$0xff] }
  0x28   :  { %5026 = vst [vmem:[#allocation68_spill] sm:$0xff] %v3178_v38  ;;  %5027 = vst [vmem:[#allocation69_spill] sm:$0xff] %v3183_v36  ;;  %v3188_v39 = vld [vmem:[%s4961_s3 + $0x2d0] sm:$0xff]  ;;  %v3193_v37 = vld [vmem:[%s4961_s3 + $0x2d8] sm:$0xff] }
  0x29   :  { %5028 = vst [vmem:[#allocation70_spill] sm:$0xff] %v3188_v39  ;;  %5029 = vst [vmem:[#allocation71_spill] sm:$0xff] %v3193_v37  ;;  %v3198_v34 = vld [vmem:[%s4961_s3 + $0x2e0] sm:$0xff]  ;;  %v3203_v32 = vld [vmem:[%s4961_s3 + $0x2e8] sm:$0xff] }
  0x2a   :  { %5030 = vst [vmem:[#allocation72_spill] sm:$0xff] %v3198_v34  ;;  %5031 = vst [vmem:[#allocation73_spill] sm:$0xff] %v3203_v32  ;;  %v3208_v35 = vld [vmem:[%s4961_s3 + $0x2f0] sm:$0xff]  ;;  %v3213_v33 = vld [vmem:[%s4961_s3 + $0x2f8] sm:$0xff] }
  0x2b   :  { %5032 = vst [vmem:[#allocation74_spill] sm:$0xff] %v3208_v35  ;;  %5033 = vst [vmem:[#allocation75_spill] sm:$0xff] %v3213_v33  ;;  %v3218_v30 = vld [vmem:[%s4961_s3 + $0x300] sm:$0xff]  ;;  %v3223_v28 = vld [vmem:[%s4961_s3 + $0x308] sm:$0xff] }
  0x2c   :  { %5034 = vst [vmem:[#allocation76_spill] sm:$0xff] %v3218_v30  ;;  %5035 = vst [vmem:[#allocation77_spill] sm:$0xff] %v3223_v28  ;;  %v3228_v31 = vld [vmem:[%s4961_s3 + $0x310] sm:$0xff]  ;;  %v3233_v29 = vld [vmem:[%s4961_s3 + $0x318] sm:$0xff] }
  0x2d   :  { %5036 = vst [vmem:[#allocation78_spill] sm:$0xff] %v3228_v31  ;;  %5037 = vst [vmem:[#allocation79_spill] sm:$0xff] %v3233_v29  ;;  %v3238_v26 = vld [vmem:[%s4961_s3 + $0x320] sm:$0xff]  ;;  %v3243_v24 = vld [vmem:[%s4961_s3 + $0x328] sm:$0xff] }
  0x2e   :  { %5038 = vst [vmem:[#allocation80_spill] sm:$0xff] %v3238_v26  ;;  %5039 = vst [vmem:[#allocation81_spill] sm:$0xff] %v3243_v24  ;;  %v3248_v27 = vld [vmem:[%s4961_s3 + $0x330] sm:$0xff]  ;;  %v3253_v25 = vld [vmem:[%s4961_s3 + $0x338] sm:$0xff] }
  0x2f   :  { %5040 = vst [vmem:[#allocation82_spill] sm:$0xff] %v3248_v27  ;;  %5041 = vst [vmem:[#allocation83_spill] sm:$0xff] %v3253_v25  ;;  %v3258_v22 = vld [vmem:[%s4961_s3 + $0x340] sm:$0xff]  ;;  %v3263_v20 = vld [vmem:[%s4961_s3 + $0x348] sm:$0xff] }
  0x30   :  { %5042 = vst [vmem:[#allocation84_spill] sm:$0xff] %v3258_v22  ;;  %5043 = vst [vmem:[#allocation85_spill] sm:$0xff] %v3263_v20  ;;  %v3268_v26 = vld [vmem:[%s4961_s3 + $0x350] sm:$0xff]  ;;  %v3273_v27 = vld [vmem:[%s4961_s3 + $0x358] sm:$0xff] }
  0x31   :  { %5044 = vst [vmem:[#allocation86_spill] sm:$0xff] %v3268_v26  ;;  %5045 = vst [vmem:[#allocation87_spill] sm:$0xff] %v3273_v27  ;;  %v3278_v23 = vld [vmem:[%s4961_s3 + $0x360] sm:$0xff]  ;;  %v3283_v22 = vld [vmem:[%s4961_s3 + $0x368] sm:$0xff] }
  0x32   :  { %5046 = vst [vmem:[#allocation88_spill] sm:$0xff] %v3278_v23  ;;  %5047 = vst [vmem:[#allocation89_spill] sm:$0xff] %v3283_v22  ;;  %v3288_v20 = vld [vmem:[%s4961_s3 + $0x370] sm:$0xff]  ;;  %v3293_v26 = vld [vmem:[%s4961_s3 + $0x378] sm:$0xff] }
  0x33   :  { %5048 = vst [vmem:[#allocation90_spill] sm:$0xff] %v3288_v20  ;;  %5049 = vst [vmem:[#allocation91_spill] sm:$0xff] %v3293_v26  ;;  %v3298_v27 = vld [vmem:[%s4961_s3 + $0x380] sm:$0xff]  ;;  %v3303_v23 = vld [vmem:[%s4961_s3 + $0x388] sm:$0xff] }
  0x34   :  { %5050 = vst [vmem:[#allocation92_spill] sm:$0xff] %v3298_v27  ;;  %5051 = vst [vmem:[#allocation93_spill] sm:$0xff] %v3303_v23  ;;  %v3308_v22 = vld [vmem:[%s4961_s3 + $0x390] sm:$0xff]  ;;  %v3313_v20 = vld [vmem:[%s4961_s3 + $0x398] sm:$0xff] }
  0x35   :  { %5052 = vst [vmem:[#allocation94_spill] sm:$0xff] %v3308_v22  ;;  %5053 = vst [vmem:[#allocation95_spill] sm:$0xff] %v3313_v20  ;;  %v3318_v26 = vld [vmem:[%s4961_s3 + $0x3a0] sm:$0xff]  ;;  %v3323_v27 = vld [vmem:[%s4961_s3 + $0x3a8] sm:$0xff] }
  0x36   :  { %5054 = vst [vmem:[#allocation96_spill] sm:$0xff] %v3318_v26  ;;  %5055 = vst [vmem:[#allocation97_spill] sm:$0xff] %v3323_v27  ;;  %v3328_v23 = vld [vmem:[%s4961_s3 + $0x3b0] sm:$0xff]  ;;  %v3333_v22 = vld [vmem:[%s4961_s3 + $0x3b8] sm:$0xff] }
  0x37   :  { %5056 = vst [vmem:[#allocation98_spill] sm:$0xff] %v3328_v23  ;;  %5057 = vst [vmem:[#allocation99_spill] sm:$0xff] %v3333_v22  ;;  %v3338_v20 = vld [vmem:[%s4961_s3 + $0x3c0] sm:$0xff]  ;;  %v3343_v26 = vld [vmem:[%s4961_s3 + $0x3c8] sm:$0xff] }
  0x38   :  { %5058 = vst [vmem:[#allocation100_spill] sm:$0xff] %v3338_v20  ;;  %5059 = vst [vmem:[#allocation101_spill] sm:$0xff] %v3343_v26  ;;  %v3348_v27 = vld [vmem:[%s4961_s3 + $0x3d0] sm:$0xff]  ;;  %v3353_v23 = vld [vmem:[%s4961_s3 + $0x3d8] sm:$0xff] }
  0x39   :  { %5060 = vst [vmem:[#allocation102_spill] sm:$0xff] %v3348_v27  ;;  %5061 = vst [vmem:[#allocation103_spill] sm:$0xff] %v3353_v23  ;;  %v3358_v22 = vld [vmem:[%s4961_s3 + $0x3e0] sm:$0xff]  ;;  %v3363_v20 = vld [vmem:[%s4961_s3 + $0x3e8] sm:$0xff] }
  0x3a   :  { %5062 = vst [vmem:[#allocation104_spill] sm:$0xff] %v3358_v22  ;;  %5063 = vst [vmem:[#allocation105_spill] sm:$0xff] %v3363_v20  ;;  %v3368_v26 = vld [vmem:[%s4961_s3 + $0x3f0] sm:$0xff]  ;;  %v3373_v27 = vld [vmem:[%s4961_s3 + $0x3f8] sm:$0xff] }
  0x3b   :  { %5064 = vst [vmem:[#allocation106_spill] sm:$0xff] %v3368_v26  ;;  %5065 = vst [vmem:[#allocation107_spill] sm:$0xff] %v3373_v27  ;;  %v3378_v23 = vld [vmem:[%s4961_s3 + $0x400] sm:$0xff]  ;;  %v3383_v22 = vld [vmem:[%s4961_s3 + $0x408] sm:$0xff] }
  0x3c   :  { %5066 = vst [vmem:[#allocation108_spill] sm:$0xff] %v3378_v23  ;;  %5067 = vst [vmem:[#allocation109_spill] sm:$0xff] %v3383_v22  ;;  %v3388_v20 = vld [vmem:[%s4961_s3 + $0x410] sm:$0xff]  ;;  %v3393_v26 = vld [vmem:[%s4961_s3 + $0x418] sm:$0xff] }
  0x3d   :  { %5068 = vst [vmem:[#allocation110_spill] sm:$0xff] %v3388_v20  ;;  %5069 = vst [vmem:[#allocation111_spill] sm:$0xff] %v3393_v26  ;;  %v3398_v27 = vld [vmem:[%s4961_s3 + $0x420] sm:$0xff]  ;;  %v3403_v23 = vld [vmem:[%s4961_s3 + $0x428] sm:$0xff] }
  0x3e   :  { %5070 = vst [vmem:[#allocation112_spill] sm:$0xff] %v3398_v27  ;;  %5071 = vst [vmem:[#allocation113_spill] sm:$0xff] %v3403_v23  ;;  %v3408_v22 = vld [vmem:[%s4961_s3 + $0x430] sm:$0xff]  ;;  %v3413_v20 = vld [vmem:[%s4961_s3 + $0x438] sm:$0xff] }
  0x3f   :  { %5072 = vst [vmem:[#allocation114_spill] sm:$0xff] %v3408_v22  ;;  %5073 = vst [vmem:[#allocation115_spill] sm:$0xff] %v3413_v20  ;;  %v3418_v26 = vld [vmem:[%s4961_s3 + $0x440] sm:$0xff]  ;;  %v3423_v27 = vld [vmem:[%s4961_s3 + $0x448] sm:$0xff] }
  0x40   :  { %5074 = vst [vmem:[#allocation116_spill] sm:$0xff] %v3418_v26  ;;  %5075 = vst [vmem:[#allocation117_spill] sm:$0xff] %v3423_v27  ;;  %v3428_v23 = vld [vmem:[%s4961_s3 + $0x450] sm:$0xff]  ;;  %v3433_v22 = vld [vmem:[%s4961_s3 + $0x458] sm:$0xff] }
  0x41   :  { %5076 = vst [vmem:[#allocation118_spill] sm:$0xff] %v3428_v23  ;;  %5077 = vst [vmem:[#allocation119_spill] sm:$0xff] %v3433_v22  ;;  %v3438_v20 = vld [vmem:[%s4961_s3 + $0x460] sm:$0xff]  ;;  %v3443_v26 = vld [vmem:[%s4961_s3 + $0x468] sm:$0xff] }
  0x42   :  { %5078 = vst [vmem:[#allocation120_spill] sm:$0xff] %v3438_v20  ;;  %5079 = vst [vmem:[#allocation121_spill] sm:$0xff] %v3443_v26  ;;  %v3448_v27 = vld [vmem:[%s4961_s3 + $0x470] sm:$0xff]  ;;  %v3453_v23 = vld [vmem:[%s4961_s3 + $0x478] sm:$0xff] }
  0x43   :  { %5080 = vst [vmem:[#allocation122_spill] sm:$0xff] %v3448_v27  ;;  %5081 = vst [vmem:[#allocation123_spill] sm:$0xff] %v3453_v23  ;;  %v3458_v22 = vld [vmem:[%s4961_s3 + $0x480] sm:$0xff]  ;;  %v3463_v20 = vld [vmem:[%s4961_s3 + $0x488] sm:$0xff] }
  0x44   :  { %5082 = vst [vmem:[#allocation124_spill] sm:$0xff] %v3458_v22  ;;  %5083 = vst [vmem:[#allocation125_spill] sm:$0xff] %v3463_v20  ;;  %v3468_v26 = vld [vmem:[%s4961_s3 + $0x490] sm:$0xff]  ;;  %v3473_v27 = vld [vmem:[%s4961_s3 + $0x498] sm:$0xff] }
  0x45   :  { %5084 = vst [vmem:[#allocation126_spill] sm:$0xff] %v3468_v26  ;;  %5085 = vst [vmem:[#allocation127_spill] sm:$0xff] %v3473_v27  ;;  %v3478_v23 = vld [vmem:[%s4961_s3 + $0x4a0] sm:$0xff]  ;;  %v3483_v22 = vld [vmem:[%s4961_s3 + $0x4a8] sm:$0xff] }
  0x46   :  { %5086 = vst [vmem:[#allocation128_spill] sm:$0xff] %v3478_v23  ;;  %5087 = vst [vmem:[#allocation129_spill] sm:$0xff] %v3483_v22  ;;  %v3488_v20 = vld [vmem:[%s4961_s3 + $0x4b0] sm:$0xff]  ;;  %v3493_v26 = vld [vmem:[%s4961_s3 + $0x4b8] sm:$0xff] }
  0x47   :  { %5088 = vst [vmem:[#allocation130_spill] sm:$0xff] %v3488_v20  ;;  %5089 = vst [vmem:[#allocation131_spill] sm:$0xff] %v3493_v26  ;;  %v3498_v27 = vld [vmem:[%s4961_s3 + $0x4c0] sm:$0xff]  ;;  %v3503_v23 = vld [vmem:[%s4961_s3 + $0x4c8] sm:$0xff] }
  0x48   :  { %5090 = vst [vmem:[#allocation132_spill] sm:$0xff] %v3498_v27  ;;  %5091 = vst [vmem:[#allocation133_spill] sm:$0xff] %v3503_v23  ;;  %v3508_v22 = vld [vmem:[%s4961_s3 + $0x4d0] sm:$0xff]  ;;  %v3513_v20 = vld [vmem:[%s4961_s3 + $0x4d8] sm:$0xff] }
  0x49   :  { %5092 = vst [vmem:[#allocation134_spill] sm:$0xff] %v3508_v22  ;;  %5093 = vst [vmem:[#allocation135_spill] sm:$0xff] %v3513_v20  ;;  %v3518_v26 = vld [vmem:[%s4961_s3 + $0x4e0] sm:$0xff]  ;;  %v3523_v27 = vld [vmem:[%s4961_s3 + $0x4e8] sm:$0xff] }
  0x4a   :  { %5094 = vst [vmem:[#allocation136_spill] sm:$0xff] %v3518_v26  ;;  %5095 = vst [vmem:[#allocation137_spill] sm:$0xff] %v3523_v27  ;;  %v3528_v23 = vld [vmem:[%s4961_s3 + $0x4f0] sm:$0xff]  ;;  %v3533_v22 = vld [vmem:[%s4961_s3 + $0x4f8] sm:$0xff] }
  0x4b   :  { %5096 = vst [vmem:[#allocation138_spill] sm:$0xff] %v3528_v23  ;;  %5097 = vst [vmem:[#allocation139_spill] sm:$0xff] %v3533_v22  ;;  %v3538_v20 = vld [vmem:[%s4961_s3 + $0x500] sm:$0xff]  ;;  %v3543_v26 = vld [vmem:[%s4961_s3 + $0x508] sm:$0xff] }
  0x4c   :  { %5098 = vst [vmem:[#allocation140_spill] sm:$0xff] %v3538_v20  ;;  %5099 = vst [vmem:[#allocation141_spill] sm:$0xff] %v3543_v26  ;;  %v3548_v27 = vld [vmem:[%s4961_s3 + $0x510] sm:$0xff]  ;;  %v3553_v23 = vld [vmem:[%s4961_s3 + $0x518] sm:$0xff] }
  0x4d   :  { %5100 = vst [vmem:[#allocation142_spill] sm:$0xff] %v3548_v27  ;;  %5101 = vst [vmem:[#allocation143_spill] sm:$0xff] %v3553_v23  ;;  %v3558_v22 = vld [vmem:[%s4961_s3 + $0x520] sm:$0xff]  ;;  %v3563_v20 = vld [vmem:[%s4961_s3 + $0x528] sm:$0xff] }
  0x4e   :  { %5102 = vst [vmem:[#allocation144_spill] sm:$0xff] %v3558_v22  ;;  %5103 = vst [vmem:[#allocation145_spill] sm:$0xff] %v3563_v20  ;;  %v3568_v26 = vld [vmem:[%s4961_s3 + $0x530] sm:$0xff]  ;;  %v3573_v27 = vld [vmem:[%s4961_s3 + $0x538] sm:$0xff] }
  0x4f   :  { %5104 = vst [vmem:[#allocation146_spill] sm:$0xff] %v3568_v26  ;;  %5105 = vst [vmem:[#allocation147_spill] sm:$0xff] %v3573_v27  ;;  %v3578_v23 = vld [vmem:[%s4961_s3 + $0x540] sm:$0xff]  ;;  %v3583_v22 = vld [vmem:[%s4961_s3 + $0x548] sm:$0xff] }
  0x50   :  { %5106 = vst [vmem:[#allocation148_spill] sm:$0xff] %v3578_v23  ;;  %5107 = vst [vmem:[#allocation149_spill] sm:$0xff] %v3583_v22  ;;  %v3588_v20 = vld [vmem:[%s4961_s3 + $0x550] sm:$0xff]  ;;  %v3593_v26 = vld [vmem:[%s4961_s3 + $0x558] sm:$0xff] }
  0x51   :  { %5108 = vst [vmem:[#allocation150_spill] sm:$0xff] %v3588_v20  ;;  %5109 = vst [vmem:[#allocation151_spill] sm:$0xff] %v3593_v26  ;;  %v3598_v27 = vld [vmem:[%s4961_s3 + $0x560] sm:$0xff]  ;;  %v3603_v23 = vld [vmem:[%s4961_s3 + $0x568] sm:$0xff] }
  0x52   :  { %5110 = vst [vmem:[#allocation152_spill] sm:$0xff] %v3598_v27  ;;  %5111 = vst [vmem:[#allocation153_spill] sm:$0xff] %v3603_v23  ;;  %v3608_v22 = vld [vmem:[%s4961_s3 + $0x570] sm:$0xff]  ;;  %v3613_v20 = vld [vmem:[%s4961_s3 + $0x578] sm:$0xff] }
  0x53   :  { %5112 = vst [vmem:[#allocation154_spill] sm:$0xff] %v3608_v22  ;;  %5113 = vst [vmem:[#allocation155_spill] sm:$0xff] %v3613_v20  ;;  %v3618_v26 = vld [vmem:[%s4961_s3 + $0x580] sm:$0xff]  ;;  %v3623_v27 = vld [vmem:[%s4961_s3 + $0x588] sm:$0xff] }
  0x54   :  { %5114 = vst [vmem:[#allocation156_spill] sm:$0xff] %v3618_v26  ;;  %5115 = vst [vmem:[#allocation157_spill] sm:$0xff] %v3623_v27  ;;  %v3628_v23 = vld [vmem:[%s4961_s3 + $0x590] sm:$0xff]  ;;  %v3633_v22 = vld [vmem:[%s4961_s3 + $0x598] sm:$0xff] }
  0x55   :  { %5116 = vst [vmem:[#allocation158_spill] sm:$0xff] %v3628_v23  ;;  %5117 = vst [vmem:[#allocation159_spill] sm:$0xff] %v3633_v22  ;;  %v3638_v20 = vld [vmem:[%s4961_s3 + $0x5a0] sm:$0xff]  ;;  %v3643_v26 = vld [vmem:[%s4961_s3 + $0x5a8] sm:$0xff] }
  0x56   :  { %5118 = vst [vmem:[#allocation160_spill] sm:$0xff] %v3638_v20  ;;  %5119 = vst [vmem:[#allocation161_spill] sm:$0xff] %v3643_v26  ;;  %v3648_v27 = vld [vmem:[%s4961_s3 + $0x5b0] sm:$0xff]  ;;  %v3653_v23 = vld [vmem:[%s4961_s3 + $0x5b8] sm:$0xff] }
  0x57   :  { %5120 = vst [vmem:[#allocation162_spill] sm:$0xff] %v3648_v27  ;;  %5121 = vst [vmem:[#allocation163_spill] sm:$0xff] %v3653_v23  ;;  %v3658_v22 = vld [vmem:[%s4961_s3 + $0x5c0] sm:$0xff]  ;;  %v3663_v20 = vld [vmem:[%s4961_s3 + $0x5c8] sm:$0xff] }
  0x58   :  { %5122 = vst [vmem:[#allocation164_spill] sm:$0xff] %v3658_v22  ;;  %5123 = vst [vmem:[#allocation165_spill] sm:$0xff] %v3663_v20  ;;  %v3668_v26 = vld [vmem:[%s4961_s3 + $0x5d0] sm:$0xff]  ;;  %v3673_v27 = vld [vmem:[%s4961_s3 + $0x5d8] sm:$0xff] }
  0x59   :  { %5124 = vst [vmem:[#allocation166_spill] sm:$0xff] %v3668_v26  ;;  %5125 = vst [vmem:[#allocation167_spill] sm:$0xff] %v3673_v27  ;;  %v3678_v23 = vld [vmem:[%s4961_s3 + $0x5e0] sm:$0xff]  ;;  %v3683_v22 = vld [vmem:[%s4961_s3 + $0x5e8] sm:$0xff] }
  0x5a   :  { %5126 = vst [vmem:[#allocation168_spill] sm:$0xff] %v3678_v23  ;;  %5127 = vst [vmem:[#allocation169_spill] sm:$0xff] %v3683_v22  ;;  %v3688_v20 = vld [vmem:[%s4961_s3 + $0x5f0] sm:$0xff]  ;;  %v3693_v26 = vld [vmem:[%s4961_s3 + $0x5f8] sm:$0xff] }
  0x5b   :  { %5128 = vst [vmem:[#allocation170_spill] sm:$0xff] %v3688_v20  ;;  %5129 = vst [vmem:[#allocation171_spill] sm:$0xff] %v3693_v26  ;;  %v3698_v27 = vld [vmem:[%s4961_s3 + $0x600] sm:$0xff]  ;;  %v3703_v23 = vld [vmem:[%s4961_s3 + $0x608] sm:$0xff] }
  0x5c   :  { %5130 = vst [vmem:[#allocation172_spill] sm:$0xff] %v3698_v27  ;;  %5131 = vst [vmem:[#allocation173_spill] sm:$0xff] %v3703_v23  ;;  %v3708_v22 = vld [vmem:[%s4961_s3 + $0x610] sm:$0xff]  ;;  %v3713_v20 = vld [vmem:[%s4961_s3 + $0x618] sm:$0xff] }
  0x5d   :  { %5132 = vst [vmem:[#allocation174_spill] sm:$0xff] %v3708_v22  ;;  %5133 = vst [vmem:[#allocation175_spill] sm:$0xff] %v3713_v20  ;;  %v3718_v26 = vld [vmem:[%s4961_s3 + $0x620] sm:$0xff]  ;;  %v3723_v27 = vld [vmem:[%s4961_s3 + $0x628] sm:$0xff] }
  0x5e   :  { %5134 = vst [vmem:[#allocation176_spill] sm:$0xff] %v3718_v26  ;;  %5135 = vst [vmem:[#allocation177_spill] sm:$0xff] %v3723_v27  ;;  %v3728_v23 = vld [vmem:[%s4961_s3 + $0x630] sm:$0xff]  ;;  %v3733_v22 = vld [vmem:[%s4961_s3 + $0x638] sm:$0xff] }
  0x5f   :  { %5136 = vst [vmem:[#allocation178_spill] sm:$0xff] %v3728_v23  ;;  %5137 = vst [vmem:[#allocation179_spill] sm:$0xff] %v3733_v22  ;;  %v3738_v20 = vld [vmem:[%s4961_s3 + $0x640] sm:$0xff]  ;;  %v3743_v26 = vld [vmem:[%s4961_s3 + $0x648] sm:$0xff] }
  0x60   :  { %5138 = vst [vmem:[#allocation180_spill] sm:$0xff] %v3738_v20  ;;  %5139 = vst [vmem:[#allocation181_spill] sm:$0xff] %v3743_v26  ;;  %v3748_v27 = vld [vmem:[%s4961_s3 + $0x650] sm:$0xff]  ;;  %v3753_v23 = vld [vmem:[%s4961_s3 + $0x658] sm:$0xff] }
  0x61   :  { %5140 = vst [vmem:[#allocation182_spill] sm:$0xff] %v3748_v27  ;;  %5141 = vst [vmem:[#allocation183_spill] sm:$0xff] %v3753_v23  ;;  %v3758_v22 = vld [vmem:[%s4961_s3 + $0x660] sm:$0xff]  ;;  %v3763_v20 = vld [vmem:[%s4961_s3 + $0x668] sm:$0xff] }
  0x62   :  { %5142 = vst [vmem:[#allocation184_spill] sm:$0xff] %v3758_v22  ;;  %5143 = vst [vmem:[#allocation185_spill] sm:$0xff] %v3763_v20  ;;  %v3768_v26 = vld [vmem:[%s4961_s3 + $0x670] sm:$0xff]  ;;  %v3773_v27 = vld [vmem:[%s4961_s3 + $0x678] sm:$0xff] }
  0x63   :  { %5144 = vst [vmem:[#allocation186_spill] sm:$0xff] %v3768_v26  ;;  %5145 = vst [vmem:[#allocation187_spill] sm:$0xff] %v3773_v27  ;;  %v3778_v23 = vld [vmem:[%s4961_s3 + $0x680] sm:$0xff]  ;;  %v3783_v22 = vld [vmem:[%s4961_s3 + $0x688] sm:$0xff] }
  0x64   :  { %5146 = vst [vmem:[#allocation188_spill] sm:$0xff] %v3778_v23  ;;  %5147 = vst [vmem:[#allocation189_spill] sm:$0xff] %v3783_v22  ;;  %v3788_v20 = vld [vmem:[%s4961_s3 + $0x690] sm:$0xff]  ;;  %v3793_v26 = vld [vmem:[%s4961_s3 + $0x698] sm:$0xff] }
  0x65   :  { %5148 = vst [vmem:[#allocation190_spill] sm:$0xff] %v3788_v20  ;;  %5149 = vst [vmem:[#allocation191_spill] sm:$0xff] %v3793_v26  ;;  %v3798_v27 = vld [vmem:[%s4961_s3 + $0x6a0] sm:$0xff]  ;;  %v3803_v23 = vld [vmem:[%s4961_s3 + $0x6a8] sm:$0xff] }
  0x66   :  { %5150 = vst [vmem:[#allocation192_spill] sm:$0xff] %v3798_v27  ;;  %5151 = vst [vmem:[#allocation193_spill] sm:$0xff] %v3803_v23  ;;  %v3808_v22 = vld [vmem:[%s4961_s3 + $0x6b0] sm:$0xff]  ;;  %v3813_v20 = vld [vmem:[%s4961_s3 + $0x6b8] sm:$0xff] }
  0x67   :  { %5152 = vst [vmem:[#allocation194_spill] sm:$0xff] %v3808_v22  ;;  %5153 = vst [vmem:[#allocation195_spill] sm:$0xff] %v3813_v20  ;;  %v3818_v26 = vld [vmem:[%s4961_s3 + $0x6c0] sm:$0xff]  ;;  %v3823_v27 = vld [vmem:[%s4961_s3 + $0x6c8] sm:$0xff] }
  0x68   :  { %5154 = vst [vmem:[#allocation196_spill] sm:$0xff] %v3818_v26  ;;  %5155 = vst [vmem:[#allocation197_spill] sm:$0xff] %v3823_v27  ;;  %v3828_v23 = vld [vmem:[%s4961_s3 + $0x6d0] sm:$0xff]  ;;  %v3833_v22 = vld [vmem:[%s4961_s3 + $0x6d8] sm:$0xff] }
  0x69   :  { %5156 = vst [vmem:[#allocation198_spill] sm:$0xff] %v3828_v23  ;;  %5157 = vst [vmem:[#allocation199_spill] sm:$0xff] %v3833_v22  ;;  %v3838_v20 = vld [vmem:[%s4961_s3 + $0x6e0] sm:$0xff]  ;;  %v3843_v26 = vld [vmem:[%s4961_s3 + $0x6e8] sm:$0xff] }
  0x6a   :  { %5158 = vst [vmem:[#allocation200_spill] sm:$0xff] %v3838_v20  ;;  %5159 = vst [vmem:[#allocation201_spill] sm:$0xff] %v3843_v26  ;;  %v3848_v27 = vld [vmem:[%s4961_s3 + $0x6f0] sm:$0xff]  ;;  %v3853_v23 = vld [vmem:[%s4961_s3 + $0x6f8] sm:$0xff] }
  0x6b   :  { %5160 = vst [vmem:[#allocation202_spill] sm:$0xff] %v3848_v27  ;;  %5161 = vst [vmem:[#allocation203_spill] sm:$0xff] %v3853_v23  ;;  %v3858_v22 = vld [vmem:[%s4961_s3 + $0x700] sm:$0xff]  ;;  %v3863_v20 = vld [vmem:[%s4961_s3 + $0x708] sm:$0xff] }
  0x6c   :  { %5162 = vst [vmem:[#allocation204_spill] sm:$0xff] %v3858_v22  ;;  %5163 = vst [vmem:[#allocation205_spill] sm:$0xff] %v3863_v20  ;;  %v3868_v26 = vld [vmem:[%s4961_s3 + $0x710] sm:$0xff]  ;;  %v3873_v27 = vld [vmem:[%s4961_s3 + $0x718] sm:$0xff] }
  0x6d   :  { %5164 = vst [vmem:[#allocation206_spill] sm:$0xff] %v3868_v26  ;;  %5165 = vst [vmem:[#allocation207_spill] sm:$0xff] %v3873_v27  ;;  %v3878_v23 = vld [vmem:[%s4961_s3 + $0x720] sm:$0xff]  ;;  %v3883_v22 = vld [vmem:[%s4961_s3 + $0x728] sm:$0xff] }
  0x6e   :  { %5166 = vst [vmem:[#allocation208_spill] sm:$0xff] %v3878_v23  ;;  %5167 = vst [vmem:[#allocation209_spill] sm:$0xff] %v3883_v22  ;;  %v3888_v20 = vld [vmem:[%s4961_s3 + $0x730] sm:$0xff]  ;;  %v3893_v26 = vld [vmem:[%s4961_s3 + $0x738] sm:$0xff] }
  0x6f   :  { %5168 = vst [vmem:[#allocation210_spill] sm:$0xff] %v3888_v20  ;;  %5169 = vst [vmem:[#allocation211_spill] sm:$0xff] %v3893_v26  ;;  %v3898_v27 = vld [vmem:[%s4961_s3 + $0x740] sm:$0xff]  ;;  %v3903_v23 = vld [vmem:[%s4961_s3 + $0x748] sm:$0xff] }
  0x70   :  { %5170 = vst [vmem:[#allocation212_spill] sm:$0xff] %v3898_v27  ;;  %5171 = vst [vmem:[#allocation213_spill] sm:$0xff] %v3903_v23  ;;  %v3908_v22 = vld [vmem:[%s4961_s3 + $0x750] sm:$0xff]  ;;  %v3913_v20 = vld [vmem:[%s4961_s3 + $0x758] sm:$0xff] }
  0x71   :  { %5172 = vst [vmem:[#allocation214_spill] sm:$0xff] %v3908_v22  ;;  %5173 = vst [vmem:[#allocation215_spill] sm:$0xff] %v3913_v20  ;;  %v3918_v26 = vld [vmem:[%s4961_s3 + $0x760] sm:$0xff]  ;;  %v3923_v27 = vld [vmem:[%s4961_s3 + $0x768] sm:$0xff] }
  0x72   :  { %5174 = vst [vmem:[#allocation216_spill] sm:$0xff] %v3918_v26  ;;  %5175 = vst [vmem:[#allocation217_spill] sm:$0xff] %v3923_v27  ;;  %v3928_v23 = vld [vmem:[%s4961_s3 + $0x770] sm:$0xff]  ;;  %v3933_v22 = vld [vmem:[%s4961_s3 + $0x778] sm:$0xff] }
  0x73   :  { %5176 = vst [vmem:[#allocation218_spill] sm:$0xff] %v3928_v23  ;;  %5177 = vst [vmem:[#allocation219_spill] sm:$0xff] %v3933_v22  ;;  %v3938_v20 = vld [vmem:[%s4961_s3 + $0x780] sm:$0xff]  ;;  %v3943_v26 = vld [vmem:[%s4961_s3 + $0x788] sm:$0xff] }
  0x74   :  { %5178 = vst [vmem:[#allocation220_spill] sm:$0xff] %v3938_v20  ;;  %5179 = vst [vmem:[#allocation221_spill] sm:$0xff] %v3943_v26  ;;  %v3948_v27 = vld [vmem:[%s4961_s3 + $0x790] sm:$0xff]  ;;  %v3953_v23 = vld [vmem:[%s4961_s3 + $0x798] sm:$0xff] }
  0x75   :  { %5180 = vst [vmem:[#allocation222_spill] sm:$0xff] %v3948_v27  ;;  %5181 = vst [vmem:[#allocation223_spill] sm:$0xff] %v3953_v23  ;;  %v3958_v22 = vld [vmem:[%s4961_s3 + $0x7a0] sm:$0xff]  ;;  %v3963_v20 = vld [vmem:[%s4961_s3 + $0x7a8] sm:$0xff] }
  0x76   :  { %5182 = vst [vmem:[#allocation224_spill] sm:$0xff] %v3958_v22  ;;  %5183 = vst [vmem:[#allocation225_spill] sm:$0xff] %v3963_v20  ;;  %v3968_v26 = vld [vmem:[%s4961_s3 + $0x7b0] sm:$0xff]  ;;  %v3973_v27 = vld [vmem:[%s4961_s3 + $0x7b8] sm:$0xff] }
  0x77   :  { %5184 = vst [vmem:[#allocation226_spill] sm:$0xff] %v3968_v26  ;;  %5185 = vst [vmem:[#allocation227_spill] sm:$0xff] %v3973_v27  ;;  %v3978_v23 = vld [vmem:[%s4961_s3 + $0x7c0] sm:$0xff]  ;;  %v3983_v22 = vld [vmem:[%s4961_s3 + $0x7c8] sm:$0xff] }
  0x78   :  { %5186 = vst [vmem:[#allocation228_spill] sm:$0xff] %v3978_v23  ;;  %5187 = vst [vmem:[#allocation229_spill] sm:$0xff] %v3983_v22  ;;  %v3988_v20 = vld [vmem:[%s4961_s3 + $0x7d0] sm:$0xff]  ;;  %v3993_v26 = vld [vmem:[%s4961_s3 + $0x7d8] sm:$0xff] }
  0x79   :  { %5188 = vst [vmem:[#allocation230_spill] sm:$0xff] %v3988_v20  ;;  %5189 = vst [vmem:[#allocation231_spill] sm:$0xff] %v3993_v26  ;;  %v3998_v27 = vld [vmem:[%s4961_s3 + $0x7e0] sm:$0xff]  ;;  %v4003_v23 = vld [vmem:[%s4961_s3 + $0x7e8] sm:$0xff] }
  0x7a   :  { %5190 = vst [vmem:[#allocation232_spill] sm:$0xff] %v3998_v27  ;;  %5191 = vst [vmem:[#allocation233_spill] sm:$0xff] %v4003_v23  ;;  %v4008_v22 = vld [vmem:[%s4961_s3 + $0x7f0] sm:$0xff]  ;;  %v4013_v20 = vld [vmem:[%s4961_s3 + $0x7f8] sm:$0xff] }
  0x7b   :  { %5192 = vst [vmem:[#allocation234_spill] sm:$0xff] %v4008_v22  ;;  %5193 = vst [vmem:[#allocation235_spill] sm:$0xff] %v4013_v20 }
  0x7c   :  { %586 = vsyncadd [#allocation4], 32768  ;;  %v4018_v27 = vld [vmem:[%s4963_s5] sm:$0xff]  ;;  %v4023_v23 = vld [vmem:[%s4963_s5 + $0x8] sm:$0xff] }
  0x7d   :  { %5194 = vst [vmem:[#allocation236_spill] sm:$0xff] %v4018_v27  ;;  %5195 = vst [vmem:[#allocation237_spill] sm:$0xff] %v4023_v23  ;;  %v4028_v22 = vld [vmem:[%s4963_s5 + $0x10] sm:$0xff]  ;;  %v4033_v20 = vld [vmem:[%s4963_s5 + $0x18] sm:$0xff] }
  0x7e   :  { %5196 = vst [vmem:[#allocation238_spill] sm:$0xff] %v4028_v22  ;;  %5197 = vst [vmem:[#allocation239_spill] sm:$0xff] %v4033_v20  ;;  %v4038_v26 = vld [vmem:[%s4963_s5 + $0x20] sm:$0xff]  ;;  %v4043_v27 = vld [vmem:[%s4963_s5 + $0x28] sm:$0xff] }
  0x7f   :  { %5198 = vst [vmem:[#allocation240_spill] sm:$0xff] %v4038_v26  ;;  %5199 = vst [vmem:[#allocation241_spill] sm:$0xff] %v4043_v27  ;;  %v4048_v23 = vld [vmem:[%s4963_s5 + $0x30] sm:$0xff]  ;;  %v4053_v22 = vld [vmem:[%s4963_s5 + $0x38] sm:$0xff] }
  0x80   :  { %5200 = vst [vmem:[#allocation242_spill] sm:$0xff] %v4048_v23  ;;  %5201 = vst [vmem:[#allocation243_spill] sm:$0xff] %v4053_v22  ;;  %v4058_v20 = vld [vmem:[%s4963_s5 + $0x40] sm:$0xff]  ;;  %v4063_v26 = vld [vmem:[%s4963_s5 + $0x48] sm:$0xff] }
  0x81   :  { %5202 = vst [vmem:[#allocation244_spill] sm:$0xff] %v4058_v20  ;;  %5203 = vst [vmem:[#allocation245_spill] sm:$0xff] %v4063_v26  ;;  %v4068_v27 = vld [vmem:[%s4963_s5 + $0x50] sm:$0xff]  ;;  %v4073_v23 = vld [vmem:[%s4963_s5 + $0x58] sm:$0xff] }
  0x82   :  { %5204 = vst [vmem:[#allocation246_spill] sm:$0xff] %v4068_v27  ;;  %5205 = vst [vmem:[#allocation247_spill] sm:$0xff] %v4073_v23  ;;  %v4078_v22 = vld [vmem:[%s4963_s5 + $0x60] sm:$0xff]  ;;  %v4083_v20 = vld [vmem:[%s4963_s5 + $0x68] sm:$0xff] }
  0x83   :  { %5206 = vst [vmem:[#allocation248_spill] sm:$0xff] %v4078_v22  ;;  %5207 = vst [vmem:[#allocation249_spill] sm:$0xff] %v4083_v20  ;;  %v4088_v26 = vld [vmem:[%s4963_s5 + $0x70] sm:$0xff]  ;;  %v4093_v27 = vld [vmem:[%s4963_s5 + $0x78] sm:$0xff] }
  0x84   :  { %5208 = vst [vmem:[#allocation250_spill] sm:$0xff] %v4088_v26  ;;  %5209 = vst [vmem:[#allocation251_spill] sm:$0xff] %v4093_v27  ;;  %v4098_v23 = vld [vmem:[%s4963_s5 + $0x80] sm:$0xff]  ;;  %v4103_v22 = vld [vmem:[%s4963_s5 + $0x88] sm:$0xff] }
  0x85   :  { %5210 = vst [vmem:[#allocation252_spill] sm:$0xff] %v4098_v23  ;;  %5211 = vst [vmem:[#allocation253_spill] sm:$0xff] %v4103_v22  ;;  %v4108_v20 = vld [vmem:[%s4963_s5 + $0x90] sm:$0xff]  ;;  %v4113_v26 = vld [vmem:[%s4963_s5 + $0x98] sm:$0xff] }
  0x86   :  { %5212 = vst [vmem:[#allocation254_spill] sm:$0xff] %v4108_v20  ;;  %5213 = vst [vmem:[#allocation255_spill] sm:$0xff] %v4113_v26  ;;  %v4118_v27 = vld [vmem:[%s4963_s5 + $0xa0] sm:$0xff]  ;;  %v4123_v23 = vld [vmem:[%s4963_s5 + $0xa8] sm:$0xff] }
  0x87   :  { %5214 = vst [vmem:[#allocation256_spill] sm:$0xff] %v4118_v27  ;;  %5215 = vst [vmem:[#allocation257_spill] sm:$0xff] %v4123_v23  ;;  %v4128_v22 = vld [vmem:[%s4963_s5 + $0xb0] sm:$0xff]  ;;  %v4133_v20 = vld [vmem:[%s4963_s5 + $0xb8] sm:$0xff] }
  0x88   :  { %5216 = vst [vmem:[#allocation258_spill] sm:$0xff] %v4128_v22  ;;  %5217 = vst [vmem:[#allocation259_spill] sm:$0xff] %v4133_v20  ;;  %v4138_v26 = vld [vmem:[%s4963_s5 + $0xc0] sm:$0xff]  ;;  %v4143_v27 = vld [vmem:[%s4963_s5 + $0xc8] sm:$0xff] }
  0x89   :  { %5218 = vst [vmem:[#allocation260_spill] sm:$0xff] %v4138_v26  ;;  %5219 = vst [vmem:[#allocation261_spill] sm:$0xff] %v4143_v27  ;;  %v4148_v23 = vld [vmem:[%s4963_s5 + $0xd0] sm:$0xff]  ;;  %v4153_v22 = vld [vmem:[%s4963_s5 + $0xd8] sm:$0xff] }
  0x8a   :  { %5220 = vst [vmem:[#allocation262_spill] sm:$0xff] %v4148_v23  ;;  %5221 = vst [vmem:[#allocation263_spill] sm:$0xff] %v4153_v22  ;;  %v4158_v20 = vld [vmem:[%s4963_s5 + $0xe0] sm:$0xff]  ;;  %v4163_v26 = vld [vmem:[%s4963_s5 + $0xe8] sm:$0xff] }
  0x8b   :  { %5222 = vst [vmem:[#allocation264_spill] sm:$0xff] %v4158_v20  ;;  %5223 = vst [vmem:[#allocation265_spill] sm:$0xff] %v4163_v26  ;;  %v4168_v27 = vld [vmem:[%s4963_s5 + $0xf0] sm:$0xff]  ;;  %v4173_v23 = vld [vmem:[%s4963_s5 + $0xf8] sm:$0xff] }
  0x8c   :  { %5224 = vst [vmem:[#allocation266_spill] sm:$0xff] %v4168_v27  ;;  %5225 = vst [vmem:[#allocation267_spill] sm:$0xff] %v4173_v23  ;;  %v4178_v22 = vld [vmem:[%s4963_s5 + $0x100] sm:$0xff]  ;;  %v4183_v20 = vld [vmem:[%s4963_s5 + $0x108] sm:$0xff] }
  0x8d   :  { %5226 = vst [vmem:[#allocation268_spill] sm:$0xff] %v4178_v22  ;;  %5227 = vst [vmem:[#allocation269_spill] sm:$0xff] %v4183_v20  ;;  %v4188_v26 = vld [vmem:[%s4963_s5 + $0x110] sm:$0xff]  ;;  %v4193_v27 = vld [vmem:[%s4963_s5 + $0x118] sm:$0xff] }
  0x8e   :  { %5228 = vst [vmem:[#allocation270_spill] sm:$0xff] %v4188_v26  ;;  %5229 = vst [vmem:[#allocation271_spill] sm:$0xff] %v4193_v27  ;;  %v4198_v23 = vld [vmem:[%s4963_s5 + $0x120] sm:$0xff]  ;;  %v4203_v22 = vld [vmem:[%s4963_s5 + $0x128] sm:$0xff] }
  0x8f   :  { %5230 = vst [vmem:[#allocation272_spill] sm:$0xff] %v4198_v23  ;;  %5231 = vst [vmem:[#allocation273_spill] sm:$0xff] %v4203_v22  ;;  %v4208_v20 = vld [vmem:[%s4963_s5 + $0x130] sm:$0xff]  ;;  %v4213_v26 = vld [vmem:[%s4963_s5 + $0x138] sm:$0xff] }
  0x90   :  { %5232 = vst [vmem:[#allocation274_spill] sm:$0xff] %v4208_v20  ;;  %5233 = vst [vmem:[#allocation275_spill] sm:$0xff] %v4213_v26  ;;  %v4218_v27 = vld [vmem:[%s4963_s5 + $0x140] sm:$0xff]  ;;  %v4223_v23 = vld [vmem:[%s4963_s5 + $0x148] sm:$0xff] }
  0x91   :  { %5234 = vst [vmem:[#allocation276_spill] sm:$0xff] %v4218_v27  ;;  %5235 = vst [vmem:[#allocation277_spill] sm:$0xff] %v4223_v23  ;;  %v4228_v22 = vld [vmem:[%s4963_s5 + $0x150] sm:$0xff]  ;;  %v4233_v20 = vld [vmem:[%s4963_s5 + $0x158] sm:$0xff] }
  0x92   :  { %5236 = vst [vmem:[#allocation278_spill] sm:$0xff] %v4228_v22  ;;  %5237 = vst [vmem:[#allocation279_spill] sm:$0xff] %v4233_v20  ;;  %v4238_v26 = vld [vmem:[%s4963_s5 + $0x160] sm:$0xff]  ;;  %v4243_v27 = vld [vmem:[%s4963_s5 + $0x168] sm:$0xff] }
  0x93   :  { %5238 = vst [vmem:[#allocation280_spill] sm:$0xff] %v4238_v26  ;;  %5239 = vst [vmem:[#allocation281_spill] sm:$0xff] %v4243_v27  ;;  %v4248_v23 = vld [vmem:[%s4963_s5 + $0x170] sm:$0xff]  ;;  %v4253_v22 = vld [vmem:[%s4963_s5 + $0x178] sm:$0xff] }
  0x94   :  { %5240 = vst [vmem:[#allocation282_spill] sm:$0xff] %v4248_v23  ;;  %5241 = vst [vmem:[#allocation283_spill] sm:$0xff] %v4253_v22  ;;  %v4258_v20 = vld [vmem:[%s4963_s5 + $0x180] sm:$0xff]  ;;  %v4263_v26 = vld [vmem:[%s4963_s5 + $0x188] sm:$0xff] }
  0x95   :  { %5242 = vst [vmem:[#allocation284_spill] sm:$0xff] %v4258_v20  ;;  %5243 = vst [vmem:[#allocation285_spill] sm:$0xff] %v4263_v26  ;;  %v4268_v27 = vld [vmem:[%s4963_s5 + $0x190] sm:$0xff]  ;;  %v4273_v23 = vld [vmem:[%s4963_s5 + $0x198] sm:$0xff] }
  0x96   :  { %5244 = vst [vmem:[#allocation286_spill] sm:$0xff] %v4268_v27  ;;  %5245 = vst [vmem:[#allocation287_spill] sm:$0xff] %v4273_v23  ;;  %v4278_v22 = vld [vmem:[%s4963_s5 + $0x1a0] sm:$0xff]  ;;  %v4283_v20 = vld [vmem:[%s4963_s5 + $0x1a8] sm:$0xff] }
  0x97   :  { %5246 = vst [vmem:[#allocation288_spill] sm:$0xff] %v4278_v22  ;;  %5247 = vst [vmem:[#allocation289_spill] sm:$0xff] %v4283_v20  ;;  %v4288_v26 = vld [vmem:[%s4963_s5 + $0x1b0] sm:$0xff]  ;;  %v4293_v27 = vld [vmem:[%s4963_s5 + $0x1b8] sm:$0xff] }
  0x98   :  { %5248 = vst [vmem:[#allocation290_spill] sm:$0xff] %v4288_v26  ;;  %5249 = vst [vmem:[#allocation291_spill] sm:$0xff] %v4293_v27  ;;  %v4298_v23 = vld [vmem:[%s4963_s5 + $0x1c0] sm:$0xff]  ;;  %v4303_v22 = vld [vmem:[%s4963_s5 + $0x1c8] sm:$0xff] }
  0x99   :  { %5250 = vst [vmem:[#allocation292_spill] sm:$0xff] %v4298_v23  ;;  %5251 = vst [vmem:[#allocation293_spill] sm:$0xff] %v4303_v22  ;;  %v4308_v20 = vld [vmem:[%s4963_s5 + $0x1d0] sm:$0xff]  ;;  %v4313_v26 = vld [vmem:[%s4963_s5 + $0x1d8] sm:$0xff] }
  0x9a   :  { %5252 = vst [vmem:[#allocation294_spill] sm:$0xff] %v4308_v20  ;;  %5253 = vst [vmem:[#allocation295_spill] sm:$0xff] %v4313_v26  ;;  %v4318_v27 = vld [vmem:[%s4963_s5 + $0x1e0] sm:$0xff]  ;;  %v4323_v23 = vld [vmem:[%s4963_s5 + $0x1e8] sm:$0xff] }
  0x9b   :  { %5254 = vst [vmem:[#allocation296_spill] sm:$0xff] %v4318_v27  ;;  %5255 = vst [vmem:[#allocation297_spill] sm:$0xff] %v4323_v23  ;;  %v4328_v22 = vld [vmem:[%s4963_s5 + $0x1f0] sm:$0xff]  ;;  %v4333_v20 = vld [vmem:[%s4963_s5 + $0x1f8] sm:$0xff] }
  0x9c   :  { %5256 = vst [vmem:[#allocation298_spill] sm:$0xff] %v4328_v22  ;;  %5257 = vst [vmem:[#allocation299_spill] sm:$0xff] %v4333_v20 }
  0x9d   :  { %755 = vsyncadd [#allocation4 + $0x1], 8192  ;;  %v770_v27 = vld [vmem:[%s4959_s1] sm:$0xff]  ;;  %v771_v26 = vld [vmem:[%s4959_s1 + $0x8] sm:$0xff]  ;;  %vm774_vm0 = vcmask 261120   ;;  %vm956_vm1 = vcmask 1043456  }
  0x9e   :  { %v2245_v23 = vpack.c.bf16 %v771_v26, %v770_v27  ;;  %v772_v22 = vld [vmem:[%s4959_s1 + $0x10] sm:$0xff]  ;;  %v773_v21 = vld [vmem:[%s4959_s1 + $0x18] sm:$0xff]  ;;  %v756_v20 = vld [vmem:[%s4958_s0] sm:$0xff]  ;;  %vm1020_vm2 = vcmask 1042432   ;;  %vm1025_vm3 = vcmask 1041408   ;;  %vm1030_vm4 = vcmask 1040384  }
  0x9f   :  { %v2249_v25 = vpack.c.bf16 %v773_v21, %v772_v22  ;;  %2189 = vmatprep.mubr.msk.f32.mxu0 %vm774_vm0, %v756_v20  ;;  %v757_v26 = vld [vmem:[%s4958_s0 + $0x8] sm:$0xff]  ;;  %v758_v27 = vld [vmem:[%s4958_s0 + $0x10] sm:$0xff]  ;;  %v759_v20 = vld [vmem:[%s4958_s0 + $0x18] sm:$0xff]  ;;  %vm1036_vm5 = vcmask 1046528   ;;  %vm1049_vm6 = vcmask 1045504  }
  0xa0   :  { %2246 = vmatprep.subr.bf16.mxu0 %v2245_v23  ;;  %v760_v21 = vld [vmem:[%s4958_s0 + $0x20] sm:$0xff]  ;;  %v761_v22 = vld [vmem:[%s4958_s0 + $0x28] sm:$0xff] }
  0xa1   :  { %2248 = vmatpush3.bf16.msra.mxu0 %v2245_v23  ;;  %v762_v23 = vld [vmem:[%s4958_s0 + $0x30] sm:$0xff] }
  0xa2   :  { %2250 = vmatprep.subr.bf16.mxu0 %v2249_v25 }
  0xa5   :  { %2252 = vmatpush3.bf16.msra.mxu0 %v2249_v25  ;;  %v763_v25 = vld [vmem:[%s4958_s0 + $0x38] sm:$0xff] }
  0xa8   :  { %2190 = vmatmul.mubr.msk.f32.vlgmr.msra.gmra.mrb[0].mxu0 %vm774_vm0, %v757_v26  ;;  %v764_v26 = vld [vmem:[%s4958_s0 + $0x40] sm:$0xff] }
  0xa9   :  { %2192 = vmatprep.mubr.msk.f32.mxu0 %vm774_vm0, %v758_v27  ;;  %v765_v27 = vld [vmem:[%s4958_s0 + $0x48] sm:$0xff] }
  0xac   :  { %2193 = vmatmul.mubr.msk.f32.gmra.mrb[2].mxu0 %vm774_vm0, %v759_v20  ;;  %v766_v20 = vld [vmem:[%s4958_s0 + $0x50] sm:$0xff] }
  0xad   :  { %2195 = vmatprep.mubr.msk.f32.mxu0 %vm774_vm0, %v760_v21  ;;  %v767_v21 = vld [vmem:[%s4958_s0 + $0x58] sm:$0xff] }
  0xb0   :  { %2196 = vmatmul.mubr.msk.f32.gmra.mrb[4].mxu0 %vm774_vm0, %v761_v22  ;;  %v768_v22 = vld [vmem:[%s4958_s0 + $0x60] sm:$0xff] }
  0xb1   :  { %2198 = vmatprep.mubr.msk.f32.mxu0 %vm774_vm0, %v762_v23  ;;  %v769_v23 = vld [vmem:[%s4958_s0 + $0x68] sm:$0xff] }
  0xb4   :  { %2199 = vmatmul.mubr.msk.f32.gmra.mrb[6].mxu0 %vm774_vm0, %v763_v25 }
  0xb5   :  { %2201 = vmatprep.mubr.msk.f32.mxu0 %vm774_vm0, %v764_v26 }
  0xb8   :  { %2202 = vmatmul.mubr.msk.f32.gmra.mrb[8].mxu0 %vm774_vm0, %v765_v27 }
  0xb9   :  { %2204 = vmatprep.mubr.msk.f32.mxu0 %vm774_vm0, %v766_v20 }
  0xbc   :  { %2205 = vmatmul.mubr.msk.f32.gmra.mrb[10].mxu0 %vm774_vm0, %v767_v21 }
  0xbd   :  { %2207 = vmatprep.mubr.msk.f32.mxu0 %vm774_vm0, %v768_v22 }
  0xc0   :  { %2208 = vmatmul.mubr.msk.f32.gmra.mrb[12].mxu0 %vm774_vm0, %v769_v23 }
 0x17b   :  { %v2191_v25 = vpop.f32.mrb[0].mxu0 }
 0x17c   :  { %v883_v26 = vpop.f32.mrb[1].mxu0 }
 0x17f   :  { %v2194_v27 = vpop.f32.mrb[2].mxu0 }
 0x180   :  { %v893_v20 = vpop.f32.mrb[3].mxu0  ;;  %v957_v31 = vrot.slane %v2194_v27, 4 }
 0x183   :  { %v2197_v24 = vpop.f32.mrb[4].mxu0 }
 0x184   :  { %v960_v18 = vrot.slane %v2197_v24, 4  ;;  %v903_v16 = vpop.f32.mrb[5].mxu0 }
 0x185   :  { %v958_v30 = vrot.slane %v903_v16, 4 }
 0x187   :  { %v2200_v19 = vpop.f32.mrb[6].mxu0  ;;  %v959_v21 = vsel %vm956_vm1, %v957_v31, %v958_v30  ;;  %v961_v22 = vsel %vm956_vm1, %v958_v30, %v960_v18 }
 0x188   :  { %v968_v17 = vmax.f32 %v883_v26, %v959_v21  ;;  %v913_v29 = vpop.f32.mrb[7].mxu0  ;;  %v969_v28 = vmax.f32 %v2191_v25, %v961_v22 }
 0x189   :  { %v962_v14 = vrot.slane %v913_v29, 4 }
 0x18a   :  { %v972_v23 = vmax.f32 %v968_v17, %v2200_v19  ;;  %v2102_v17 = vld [vmem:[%s4960_s2] ss:$0 sm:$0xff] }
 0x18b   :  { %v971_v12 = vmax.f32 %v2194_v27, %v962_v14  ;;  %v2203_v35 = vpop.f32.mrb[8].mxu0  ;;  %v963_v34 = vsel %vm956_vm1, %v960_v18, %v962_v14 }
 0x18c   :  { %v970_v15 = vmax.f32 %v893_v20, %v963_v34  ;;  %v923_v24 = vpop.f32.mrb[9].mxu0 }
 0x18d   :  { %v973_v13 = vmax.f32 %v969_v28, %v923_v24 }
 0x18e   :  { %v974_v33 = vmax.f32 %v970_v15, %v2203_v35 }
 0x18f   :  { %v2206_v32 = vpop.f32.mrb[10].mxu0 }
 0x190   :  { %v981_v16 = vrot.slane %v2206_v32, 4  ;;  %v933_v10 = vpop.f32.mrb[11].mxu0 }
 0x191   :  { %v975_v8 = vmax.f32 %v971_v12, %v933_v10  ;;  %v980_v31 = vrot.slane %v933_v10, 4 }
 0x193   :  { %v982_v30 = vsel %vm956_vm1, %v980_v31, %v981_v16  ;;  %v2209_v26 = vpop.f32.mrb[12].mxu0 }
 0x194   :  { %v991_v19 = vmax.f32 %v972_v23, %v982_v30  ;;  %v985_v29 = vrot.slane %v2209_v26, 4  ;;  %v943_v25 = vpop.f32.mrb[13].mxu0 }
 0x195   :  { %v983_v14 = vrot.slane %v943_v25, 4 }
 0x196   :  { %v994_v18 = vmax.f32 %v975_v8, %v985_v29  ;;  %v1002_v34 = vadd.f32 %v2102_v17, %v991_v19 }
 0x197   :  { %v984_v15 = vsel %vm956_vm1, %v981_v16, %v983_v14  ;;  %v986_v28 = vsel %vm956_vm1, %v983_v14, %v985_v29 }
 0x198   :  { %v1005_v32 = vadd.f32 %v2102_v17, %v994_v18  ;;  %v1006_v12 = vmax.f32 %v1002_v34, 0.0  ;;  %v992_v10 = vmax.f32 %v973_v13, %v984_v15  ;;  %v993_v35 = vmax.f32 %v974_v33, %v986_v28 }
 0x19a   :  { %v1009_v27 = vmax.f32 %v1005_v32, 0.0  ;;  %v1003_v20 = vadd.f32 %v2102_v17, %v992_v10  ;;  %v1004_v21 = vadd.f32 %v2102_v17, %v993_v35  ;;  %v1011_v22 = vrot.slane %v1006_v12, 1 }
 0x19b   :  { %v1013_v23 = vrot.slane %v1006_v12, 2  ;;  %v1015_v31 = vrot.slane %v1006_v12, 3  ;;  %v1017_v16 = vrot.slane %v1006_v12, 4  ;;  %v1021_v26 = vrot.slane %v1006_v12, 5 }
 0x19c   :  { %v1007_v8 = vmax.f32 %v1003_v20, 0.0  ;;  %v1008_v24 = vmax.f32 %v1004_v21, 0.0  ;;  %v1047_v30 = vrot.slane %v1009_v27, 7  ;;  %v1026_v19 = vrot.slane %v1006_v12, 6 }
 0x19d   :  { %v1031_v29 = vrot.slane %v1006_v12, 7 }
 0x19e   :  { %v1022_v13 = vrot.slane %v1007_v8, 5  ;;  %v1027_v33 = vrot.slane %v1007_v8, 6  ;;  %v1032_v25 = vrot.slane %v1007_v8, 7  ;;  %v1037_v14 = vrot.slane %v1007_v8, 1 }
 0x19f   :  { %v1038_v18 = vrot.slane %v1008_v24, 1  ;;  %v1040_v34 = vrot.slane %v1008_v24, 2  ;;  %v1046_v17 = vrot.slane %v1008_v24, 7  ;;  %v1050_v15 = vrot.slane %v1007_v8, 2 }
 0x1a0   :  { %v1023_v28 = vsel %vm1020_vm2, %v1021_v26, %v1022_v13  ;;  %v1028_v32 = vsel %vm1025_vm3, %v1026_v19, %v1027_v33  ;;  %v1033_v10 = vsel %vm1030_vm4, %v1031_v29, %v1032_v25  ;;  %v2103_v35 = vrot.slane %v1008_v24, 5 }
 0x1a1   :  { %v1039_v27 = vsel %vm1036_vm5, %v1037_v14, %v1038_v18  ;;  %v1048_v20 = vsel %vm1030_vm4, %v1046_v17, %v1047_v30  ;;  %v1051_v21 = vsel %vm1049_vm6, %v1050_v15, %v1040_v34  ;;  %v1053_v39 = vrot.slane %v1038_v18, 2 }
 0x1a2   :  { %v1052_v38 = vrot.slane %v1039_v27, 2  ;;  %v1055_v11 = vrot.slane %v1040_v34, 2  ;;  %v2104_v9 = vrot.slane %v1008_v24, 6  ;;  %v1065_v37 = vrot.slane %v1046_v17, 2 }
 0x1a3   :  { %v1066_v36 = vrot.slane %v1048_v20, 2  ;;  %v4419_v8 = vsel %vm956_vm1, %v1006_v12, %v1051_v21  ;;  %v1079_v26 = vsel %vm956_vm1, %v1015_v31, %v2103_v35  ;;  %v4423_v19 = vsel %vm956_vm1, %v1023_v28, %v1046_v17 }
 0x1a4   :  { %v1054_v29 = vsel %vm1049_vm6, %v1052_v38, %v1053_v39  ;;  %v4427_v30 = vsel %vm956_vm1, %v1013_v23, %v1055_v11  ;;  %v4430_v13 = vsel %vm956_vm1, %v1017_v16, %v2104_v9  ;;  %v4433_v33 = vsel %vm956_vm1, %v1028_v32, %v1008_v24  ;;  %1479 = vmatprep.mubr.f32.mxu1 %v1079_v26 }
 0x1a5   :  { %v1067_v25 = vsel %vm1049_vm6, %v1065_v37, %v1066_v36  ;;  %v1077_v12 = vsel %vm956_vm1, %v1011_v22, %v1054_v29  ;;  %v2317_v14 = vpack.c.bf16 %v3073_v62, %v3063_v60  ;;  %v2319_v11 = vpack.c.bf16 %v3068_v61, %v3058_v58 }
 0x1a6   :  { %v4438_v31 = vsel %vm956_vm1, %v1033_v10, %v1067_v25  ;;  %v2321_v9 = vpack.c.bf16 %v3093_v57, %v3083_v56 }
 0x1a7   :  { %2665 = dma.done.wait [#allocation4], 32768 }
 0x1a8   :  { %2666 = vsyncadd [#allocation4], 4294934528  ;;  %1408 = vmatprep.mubr.f32.mxu0 %v1077_v12  ;;  %2318 = vmatprep.subr.bf16.mxu1 %v2317_v14  ;;  %v2323_v36 = vpack.c.bf16 %v3088_v59, %v3078_v63  ;;  %v2325_v37 = vpack.c.bf16 %v3113_v53, %v3103_v52  ;;  %v2327_v38 = vpack.c.bf16 %v3108_v55, %v3098_v54  ;;  %v5269_v55 = vld [vmem:[#allocation19_spill] sm:$0xff]  ;;  %v5270_v59 = vld [vmem:[#allocation72_spill] sm:$0xff]  ;;  %vm1642_vm7 = vcmask 1047556  }
 0x1a9   :  { %2320 = vmatpush1.bf16.msra.mxu1 %v2319_v11  ;;  %v2329_v39 = vpack.c.bf16 %v3133_v49, %v3123_v48  ;;  %v2331_v56 = vpack.c.bf16 %v3128_v51, %v3118_v50  ;;  %v2333_v57 = vpack.c.bf16 %v3153_v45, %v3143_v44  ;;  %v2335_v52 = vpack.c.bf16 %v3148_v47, %v3138_v46  ;;  %v5264_v47 = vld [vmem:[#allocation12_spill] sm:$0xff]  ;;  %v5265_v50 = vld [vmem:[#allocation14_spill] sm:$0xff]  ;;  %v5267_v51 = vld [vmem:[#allocation75_spill] sm:$0xff] }
 0x1aa   :  { %2322 = vmatprep.subr.bf16.mxu1 %v2321_v9  ;;  %v2337_v53 = vpack.c.bf16 %v3173_v41, %v3163_v40  ;;  %v2253_v54 = vpack.c.bf16 %v2753_v3, %v2743_v1  ;;  %v2255_v48 = vpack.c.bf16 %v2748_v2, %v2738_v0  ;;  %v2257_v49 = vpack.c.bf16 %v2773_v7, %v2763_v5  ;;  %v5258_v40 = vld [vmem:[#allocation69_spill] sm:$0xff]  ;;  %v5259_v41 = vld [vmem:[#allocation71_spill] sm:$0xff]  ;;  %v5262_v2 = vld [vmem:[#allocation68_spill] sm:$0xff] }
 0x1ab   :  { %v2339_v44 = vpack.c.bf16 %v3168_v43, %v3158_v42  ;;  %v2259_v45 = vpack.c.bf16 %v2768_v6, %v2758_v4  ;;  %v2341_v46 = vpack.c.bf16 %v5259_v41, %v5258_v40  ;;  %v5260_v1 = vld [vmem:[#allocation13_spill] sm:$0xff]  ;;  %v5261_v3 = vld [vmem:[#allocation15_spill] sm:$0xff]  ;;  %v5263_v5 = vld [vmem:[#allocation70_spill] sm:$0xff]  ;;  %v2263_v42 = vpack.c.bf16 %v5265_v50, %v5264_v47 }
 0x1ac   :  { %2254 = vmatprep.subr.bf16.mxu0 %v2253_v54  ;;  %v2261_v0 = vpack.c.bf16 %v5261_v3, %v5260_v1  ;;  %v2343_v7 = vpack.c.bf16 %v5263_v5, %v5262_v2  ;;  %v5266_v43 = vld [vmem:[#allocation73_spill] sm:$0xff]  ;;  %v5271_v60 = vld [vmem:[#allocation74_spill] sm:$0xff]  ;;  %v5272_v62 = vld [vmem:[#allocation16_spill] sm:$0xff] }
 0x1ad   :  { %2324 = vmatpush1.bf16.msra.mxu1 %v2323_v36  ;;  %2256 = vmatpush1.bf16.msra.mxu0 %v2255_v48  ;;  %v2345_v4 = vpack.c.bf16 %v5267_v51, %v5266_v43  ;;  %v5268_v6 = vld [vmem:[#allocation17_spill] sm:$0xff]  ;;  %v2347_v61 = vpack.c.bf16 %v5271_v60, %v5270_v59  ;;  %v5273_v63 = vld [vmem:[#allocation18_spill] sm:$0xff]  ;;  %v5275_v24 = vld [vmem:[#allocation79_spill] sm:$0xff] }
 0x1ae   :  { %2326 = vmatprep.subr.bf16.mxu1 %v2325_v37  ;;  %2258 = vmatprep.subr.bf16.mxu0 %v2257_v49  ;;  %v2265_v58 = vpack.c.bf16 %v5269_v55, %v5268_v6  ;;  %v2267_v22 = vpack.c.bf16 %v5273_v63, %v5272_v62  ;;  %v5274_v23 = vld [vmem:[#allocation77_spill] sm:$0xff]  ;;  %v5277_v34 = vld [vmem:[#allocation23_spill] sm:$0xff]  ;;  %v5278_v15 = vld [vmem:[#allocation76_spill] sm:$0xff] }
 0x1af   :  { %v2349_v16 = vpack.c.bf16 %v5275_v24, %v5274_v23  ;;  %v5276_v18 = vld [vmem:[#allocation21_spill] sm:$0xff]  ;;  %v5279_v28 = vld [vmem:[#allocation78_spill] sm:$0xff]  ;;  %v5280_v10 = vld [vmem:[#allocation20_spill] sm:$0xff] }
 0x1b0   :  { %v2269_v17 = vpack.c.bf16 %v5277_v34, %v5276_v18  ;;  %v2351_v32 = vpack.c.bf16 %v5279_v28, %v5278_v15  ;;  %v5281_v35 = vld [vmem:[#allocation22_spill] sm:$0xff]  ;;  %v5282_v20 = vld [vmem:[#allocation81_spill] sm:$0xff]  ;;  %v5283_v21 = vld [vmem:[#allocation83_spill] sm:$0xff] }
 0x1b1   :  { %2328 = vmatpush1.bf16.msra.mxu1 %v2327_v38  ;;  %2260 = vmatpush1.bf16.msra.mxu0 %v2259_v45  ;;  %v2271_v27 = vpack.c.bf16 %v5281_v35, %v5280_v10  ;;  %v2353_v26 = vpack.c.bf16 %v5283_v21, %v5282_v20  ;;  %v5284_v29 = vld [vmem:[#allocation25_spill] sm:$0xff]  ;;  %v5285_v25 = vld [vmem:[#allocation27_spill] sm:$0xff]  ;;  %v5286_v14 = vld [vmem:[#allocation80_spill] sm:$0xff] }
 0x1b2   :  { %2330 = vmatprep.subr.bf16.mxu1 %v2329_v39  ;;  %2262 = vmatprep.subr.bf16.mxu0 %v2261_v0  ;;  %v2273_v12 = vpack.c.bf16 %v5285_v25, %v5284_v29  ;;  %v5287_v11 = vld [vmem:[#allocation82_spill] sm:$0xff]  ;;  %v5288_v36 = vld [vmem:[#allocation24_spill] sm:$0xff]  ;;  %v5290_v39 = vld [vmem:[#allocation85_spill] sm:$0xff] }
 0x1b3   :  { %v2355_v9 = vpack.c.bf16 %v5287_v11, %v5286_v14  ;;  %v5289_v37 = vld [vmem:[#allocation26_spill] sm:$0xff]  ;;  %v5294_v48 = vld [vmem:[#allocation84_spill] sm:$0xff]  ;;  %v5299_v1 = vld [vmem:[#allocation91_spill] sm:$0xff] }
 0x1b4   :  { %v2275_v38 = vpack.c.bf16 %v5289_v37, %v5288_v36  ;;  %v5295_v49 = vld [vmem:[#allocation86_spill] sm:$0xff]  ;;  %v5296_v45 = vld [vmem:[#allocation28_spill] sm:$0xff]  ;;  %v5300_v0 = vld [vmem:[#allocation33_spill] sm:$0xff] }
 0x1b5   :  { %2332 = vmatpush1.bf16.msra.mxu1 %v2331_v56  ;;  %2264 = vmatpush1.bf16.msra.mxu0 %v2263_v42  ;;  %v5291_v56 = vld [vmem:[#allocation87_spill] sm:$0xff]  ;;  %v5297_v40 = vld [vmem:[#allocation30_spill] sm:$0xff]  ;;  %v5304_v42 = vld [vmem:[#allocation32_spill] sm:$0xff] }
 0x1b6   :  { %2334 = vmatprep.subr.bf16.mxu1 %v2333_v57  ;;  %2266 = vmatprep.subr.bf16.mxu0 %v2265_v58  ;;  %v2357_v57 = vpack.c.bf16 %v5291_v56, %v5290_v39  ;;  %v2279_v41 = vpack.c.bf16 %v5297_v40, %v5296_v45  ;;  %v5301_v2 = vld [vmem:[#allocation35_spill] sm:$0xff]  ;;  %v5303_v47 = vld [vmem:[#allocation90_spill] sm:$0xff]  ;;  %v5308_v58 = vld [vmem:[#allocation37_spill] sm:$0xff] }
 0x1b7   :  { %v2281_v5 = vpack.c.bf16 %v5301_v2, %v5300_v0  ;;  %v5305_v43 = vld [vmem:[#allocation34_spill] sm:$0xff]  ;;  %v5307_v6 = vld [vmem:[#allocation95_spill] sm:$0xff] }
 0x1b8   :  { %v2283_v51 = vpack.c.bf16 %v5305_v43, %v5304_v42  ;;  %v5309_v59 = vld [vmem:[#allocation39_spill] sm:$0xff]  ;;  %v5311_v62 = vld [vmem:[#allocation94_spill] sm:$0xff] }
 0x1b9   :  { %2336 = vmatpush1.bf16.msra.mxu1 %v2335_v52  ;;  %2268 = vmatpush1.bf16.msra.mxu0 %v2267_v22  ;;  %v5292_v52 = vld [vmem:[#allocation29_spill] sm:$0xff]  ;;  %v2285_v60 = vpack.c.bf16 %v5309_v59, %v5308_v58  ;;  %v5312_v22 = vld [vmem:[#allocation36_spill] sm:$0xff]  ;;  %v5313_v23 = vld [vmem:[#allocation38_spill] sm:$0xff] }
 0x1ba   :  { %2338 = vmatprep.subr.bf16.mxu1 %v2337_v53  ;;  %2270 = vmatprep.subr.bf16.mxu0 %v2269_v17  ;;  %v5293_v53 = vld [vmem:[#allocation31_spill] sm:$0xff]  ;;  %v2287_v24 = vpack.c.bf16 %v5313_v23, %v5312_v22  ;;  %v5316_v17 = vld [vmem:[#allocation41_spill] sm:$0xff]  ;;  %v5319_v10 = vld [vmem:[#allocation98_spill] sm:$0xff] }
 0x1bb   :  { %v2277_v54 = vpack.c.bf16 %v5293_v53, %v5292_v52  ;;  %v5315_v18 = vld [vmem:[#allocation99_spill] sm:$0xff]  ;;  %v5321_v20 = vld [vmem:[#allocation42_spill] sm:$0xff] }
 0x1bc   :  { %v5317_v15 = vld [vmem:[#allocation43_spill] sm:$0xff]  ;;  %v5327_v36 = vld [vmem:[#allocation102_spill] sm:$0xff] }
 0x1bd   :  { %2340 = vmatpush1.bf16.msra.mxu1 %v2339_v44  ;;  %2272 = vmatpush1.bf16.msra.mxu0 %v2271_v27  ;;  %v2359_v44 = vpack.c.bf16 %v5295_v49, %v5294_v48  ;;  %v2289_v28 = vpack.c.bf16 %v5317_v15, %v5316_v17  ;;  %v5320_v27 = vld [vmem:[#allocation40_spill] sm:$0xff]  ;;  %v5323_v29 = vld [vmem:[#allocation103_spill] sm:$0xff]  ;;  %v5329_v39 = vld [vmem:[#allocation46_spill] sm:$0xff] }
 0x1be   :  { %2342 = vmatprep.subr.bf16.mxu1 %v2341_v46  ;;  %2274 = vmatprep.subr.bf16.mxu0 %v2273_v12  ;;  %v5298_v46 = vld [vmem:[#allocation89_spill] sm:$0xff]  ;;  %v2291_v21 = vpack.c.bf16 %v5321_v20, %v5320_v27  ;;  %v5325_v14 = vld [vmem:[#allocation47_spill] sm:$0xff]  ;;  %v5335_v45 = vld [vmem:[#allocation106_spill] sm:$0xff] }
 0x1bf   :  { %v2361_v3 = vpack.c.bf16 %v5299_v1, %v5298_v46  ;;  %v5324_v12 = vld [vmem:[#allocation45_spill] sm:$0xff]  ;;  %v5331_v52 = vld [vmem:[#allocation107_spill] sm:$0xff]  ;;  %v5337_v46 = vld [vmem:[#allocation50_spill] sm:$0xff] }
 0x1c0   :  { %v2293_v11 = vpack.c.bf16 %v5325_v14, %v5324_v12  ;;  %v5333_v48 = vld [vmem:[#allocation51_spill] sm:$0xff]  ;;  %v5343_v42 = vld [vmem:[#allocation110_spill] sm:$0xff]  ;;  %v5360_v20 = vld [vmem:[#allocation121_spill] sm:$0xff] }
 0x1c1   :  { %2344 = vmatpush1.bf16.msra.mxu1 %v2343_v7  ;;  %2276 = vmatpush1.bf16.msra.mxu0 %v2275_v38  ;;  %v5302_v7 = vld [vmem:[#allocation88_spill] sm:$0xff]  ;;  %v5339_v0 = vld [vmem:[#allocation111_spill] sm:$0xff]  ;;  %v5347_v58 = vld [vmem:[#allocation54_spill] sm:$0xff] }
 0x1c2   :  { %2346 = vmatprep.subr.bf16.mxu1 %v2345_v4  ;;  %2278 = vmatprep.subr.bf16.mxu0 %v2277_v54  ;;  %v2363_v50 = vpack.c.bf16 %v5303_v47, %v5302_v7  ;;  %v5306_v4 = vld [vmem:[#allocation93_spill] sm:$0xff]  ;;  %v5328_v38 = vld [vmem:[#allocation44_spill] sm:$0xff]  ;;  %v5341_v7 = vld [vmem:[#allocation55_spill] sm:$0xff] }
 0x1c3   :  { %v2365_v55 = vpack.c.bf16 %v5307_v6, %v5306_v4  ;;  %v2295_v56 = vpack.c.bf16 %v5329_v39, %v5328_v38  ;;  %v5332_v54 = vld [vmem:[#allocation49_spill] sm:$0xff]  ;;  %v5345_v4 = vld [vmem:[#allocation115_spill] sm:$0xff]  ;;  %v5351_v22 = vld [vmem:[#allocation114_spill] sm:$0xff] }
 0x1c4   :  { %v2297_v49 = vpack.c.bf16 %v5333_v48, %v5332_v54  ;;  %v5355_v17 = vld [vmem:[#allocation58_spill] sm:$0xff]  ;;  %v5364_v12 = vld [vmem:[#allocation65_spill] sm:$0xff]  ;;  %v5365_v14 = vld [vmem:[#allocation67_spill] sm:$0xff] }
 0x1c5   :  { %2348 = vmatpush1.bf16.msra.mxu1 %v2347_v61  ;;  %2280 = vmatpush1.bf16.msra.mxu0 %v2279_v41  ;;  %v5310_v61 = vld [vmem:[#allocation92_spill] sm:$0xff]  ;;  %v5368_v38 = vld [vmem:[#allocation125_spill] sm:$0xff]  ;;  %v5369_v39 = vld [vmem:[#allocation127_spill] sm:$0xff] }
 0x1c6   :  { %2350 = vmatprep.subr.bf16.mxu1 %v2349_v16  ;;  %2282 = vmatprep.subr.bf16.mxu0 %v2281_v5  ;;  %v2367_v63 = vpack.c.bf16 %v5311_v62, %v5310_v61  ;;  %v5314_v16 = vld [vmem:[#allocation97_spill] sm:$0xff]  ;;  %v5336_v41 = vld [vmem:[#allocation48_spill] sm:$0xff]  ;;  %v5349_v61 = vld [vmem:[#allocation59_spill] sm:$0xff] }
 0x1c7   :  { %v2369_v34 = vpack.c.bf16 %v5315_v18, %v5314_v16  ;;  %v2299_v1 = vpack.c.bf16 %v5337_v46, %v5336_v41  ;;  %v5340_v5 = vld [vmem:[#allocation53_spill] sm:$0xff]  ;;  %v5353_v16 = vld [vmem:[#allocation119_spill] sm:$0xff]  ;;  %v5372_v54 = vld [vmem:[#allocation124_spill] sm:$0xff] }
 0x1c8   :  { %v2301_v47 = vpack.c.bf16 %v5341_v7, %v5340_v5  ;;  %v5373_v48 = vld [vmem:[#allocation126_spill] sm:$0xff]  ;;  %v5376_v41 = vld [vmem:[#allocation128_spill] sm:$0xff] }
 0x1c9   :  { %2352 = vmatpush1.bf16.msra.mxu1 %v2351_v32  ;;  %2284 = vmatpush1.bf16.msra.mxu0 %v2283_v51  ;;  %v5318_v32 = vld [vmem:[#allocation96_spill] sm:$0xff]  ;;  %v5344_v51 = vld [vmem:[#allocation113_spill] sm:$0xff]  ;;  %v5377_v46 = vld [vmem:[#allocation130_spill] sm:$0xff] }
 0x1ca   :  { %2354 = vmatprep.subr.bf16.mxu1 %v2353_v26  ;;  %2286 = vmatprep.subr.bf16.mxu0 %v2285_v60  ;;  %v2371_v35 = vpack.c.bf16 %v5319_v10, %v5318_v32  ;;  %v5322_v26 = vld [vmem:[#allocation101_spill] sm:$0xff]  ;;  %v2385_v6 = vpack.c.bf16 %v5345_v4, %v5344_v51  ;;  %v5357_v32 = vld [vmem:[#allocation63_spill] sm:$0xff]  ;;  %v5380_v5 = vld [vmem:[#allocation132_spill] sm:$0xff] }
 0x1cb   :  { %v2373_v25 = vpack.c.bf16 %v5323_v29, %v5322_v26  ;;  %v5348_v60 = vld [vmem:[#allocation57_spill] sm:$0xff]  ;;  %v5362_v26 = vld [vmem:[#allocation60_spill] sm:$0xff]  ;;  %v5363_v29 = vld [vmem:[#allocation62_spill] sm:$0xff] }
 0x1cc   :  { %v2305_v62 = vpack.c.bf16 %v5349_v61, %v5348_v60  ;;  %v5381_v7 = vld [vmem:[#allocation134_spill] sm:$0xff]  ;;  %v5384_v51 = vld [vmem:[#allocation136_spill] sm:$0xff] }
 0x1cd   :  { %2356 = vmatpush1.bf16.msra.mxu1 %v2355_v9  ;;  %2288 = vmatpush1.bf16.msra.mxu0 %v2287_v24  ;;  %v5326_v9 = vld [vmem:[#allocation100_spill] sm:$0xff]  ;;  %v5352_v24 = vld [vmem:[#allocation117_spill] sm:$0xff]  ;;  %v5385_v4 = vld [vmem:[#allocation138_spill] sm:$0xff] }
 0x1ce   :  { %2358 = vmatprep.subr.bf16.mxu1 %v2357_v57  ;;  %2290 = vmatprep.subr.bf16.mxu0 %v2289_v28  ;;  %v2375_v37 = vpack.c.bf16 %v5327_v36, %v5326_v9  ;;  %v5330_v57 = vld [vmem:[#allocation105_spill] sm:$0xff]  ;;  %v2389_v18 = vpack.c.bf16 %v5353_v16, %v5352_v24  ;;  %v5366_v9 = vld [vmem:[#allocation120_spill] sm:$0xff]  ;;  %v5367_v36 = vld [vmem:[#allocation122_spill] sm:$0xff] }
 0x1cf   :  { %v2377_v53 = vpack.c.bf16 %v5331_v52, %v5330_v57  ;;  %v5356_v28 = vld [vmem:[#allocation61_spill] sm:$0xff]  ;;  %v5370_v57 = vld [vmem:[#allocation64_spill] sm:$0xff]  ;;  %v5371_v52 = vld [vmem:[#allocation66_spill] sm:$0xff] }
 0x1d0   :  { %v2309_v10 = vpack.c.bf16 %v5357_v32, %v5356_v28  ;;  %v5389_v60 = vld [vmem:[#allocation142_spill] sm:$0xff] }
 0x1d1   :  { %2360 = vmatpush1.bf16.msra.mxu1 %v2359_v44  ;;  %2292 = vmatpush1.bf16.msra.mxu0 %v2291_v21  ;;  %v5334_v44 = vld [vmem:[#allocation104_spill] sm:$0xff]  ;;  %v5361_v21 = vld [vmem:[#allocation123_spill] sm:$0xff]  ;;  %v5393_v24 = vld [vmem:[#allocation146_spill] sm:$0xff] }
 0x1d2   :  { %2362 = vmatprep.subr.bf16.mxu1 %v2361_v3  ;;  %2294 = vmatprep.subr.bf16.mxu0 %v2293_v11  ;;  %v2379_v40 = vpack.c.bf16 %v5335_v45, %v5334_v44  ;;  %v5338_v3 = vld [vmem:[#allocation109_spill] sm:$0xff]  ;;  %v2313_v11 = vpack.c.bf16 %v5365_v14, %v5364_v12  ;;  %v5375_v45 = vld [vmem:[#allocation131_spill] sm:$0xff]  ;;  %v5397_v28 = vld [vmem:[#allocation150_spill] sm:$0xff] }
 0x1d3   :  { %v2381_v2 = vpack.c.bf16 %v5339_v0, %v5338_v3  ;;  %v5374_v44 = vld [vmem:[#allocation129_spill] sm:$0xff]  ;;  %v5379_v0 = vld [vmem:[#allocation135_spill] sm:$0xff]  ;;  %v5405_v12 = vld [vmem:[#allocation158_spill] sm:$0xff] }
 0x1d4   :  { %v5378_v3 = vld [vmem:[#allocation133_spill] sm:$0xff] }
 0x1d5   :  { %2364 = vmatpush1.bf16.msra.mxu1 %v2363_v50  ;;  %2296 = vmatpush1.bf16.msra.mxu0 %v2295_v56  ;;  %v5342_v50 = vld [vmem:[#allocation108_spill] sm:$0xff]  ;;  %v2397_v56 = vpack.c.bf16 %v5369_v39, %v5368_v38  ;;  %v5409_v38 = vld [vmem:[#allocation162_spill] sm:$0xff] }
 0x1d6   :  { %2366 = vmatprep.subr.bf16.mxu1 %v2365_v55  ;;  %2298 = vmatprep.subr.bf16.mxu0 %v2297_v49  ;;  %v2383_v43 = vpack.c.bf16 %v5343_v42, %v5342_v50  ;;  %v5346_v55 = vld [vmem:[#allocation52_spill] sm:$0xff]  ;;  %v2399_v49 = vpack.c.bf16 %v5373_v48, %v5372_v54  ;;  %v5382_v50 = vld [vmem:[#allocation137_spill] sm:$0xff]  ;;  %v5383_v42 = vld [vmem:[#allocation139_spill] sm:$0xff] }
 0x1d7   :  { %v2303_v59 = vpack.c.bf16 %v5347_v58, %v5346_v55  ;;  %v5386_v55 = vld [vmem:[#allocation141_spill] sm:$0xff]  ;;  %v5387_v58 = vld [vmem:[#allocation143_spill] sm:$0xff]  ;;  %v5413_v54 = vld [vmem:[#allocation166_spill] sm:$0xff] }
 0x1d9   :  { %2368 = vmatpush1.bf16.msra.mxu1 %v2367_v63  ;;  %2300 = vmatpush1.bf16.msra.mxu0 %v2299_v1  ;;  %v5350_v63 = vld [vmem:[#allocation112_spill] sm:$0xff]  ;;  %v2403_v1 = vpack.c.bf16 %v5377_v46, %v5376_v41  ;;  %v5417_v41 = vld [vmem:[#allocation170_spill] sm:$0xff] }
 0x1da   :  { %2370 = vmatprep.subr.bf16.mxu1 %v2369_v34  ;;  %2302 = vmatprep.subr.bf16.mxu0 %v2301_v47  ;;  %v2387_v23 = vpack.c.bf16 %v5351_v22, %v5350_v63  ;;  %v5354_v34 = vld [vmem:[#allocation56_spill] sm:$0xff]  ;;  %v2407_v47 = vpack.c.bf16 %v5381_v7, %v5380_v5  ;;  %v5391_v63 = vld [vmem:[#allocation147_spill] sm:$0xff]  ;;  %v5421_v5 = vld [vmem:[#allocation174_spill] sm:$0xff] }
 0x1db   :  { %v2307_v15 = vpack.c.bf16 %v5355_v17, %v5354_v34  ;;  %v5395_v34 = vld [vmem:[#allocation151_spill] sm:$0xff] }
 0x1dd   :  { %2372 = vmatpush1.bf16.msra.mxu1 %v2371_v35  ;;  %2304 = vmatpush1.bf16.msra.mxu0 %v2303_v59  ;;  %v5359_v35 = vld [vmem:[#allocation118_spill] sm:$0xff]  ;;  %v5388_v59 = vld [vmem:[#allocation140_spill] sm:$0xff] }
 0x1de   :  { %2374 = vmatprep.subr.bf16.mxu1 %v2373_v25  ;;  %2306 = vmatprep.subr.bf16.mxu0 %v2305_v62  ;;  %v2311_v25 = vpack.c.bf16 %v5363_v29, %v5362_v26  ;;  %v2415_v61 = vpack.c.bf16 %v5389_v60, %v5388_v59  ;;  %v5390_v62 = vld [vmem:[#allocation145_spill] sm:$0xff]  ;;  %v5403_v26 = vld [vmem:[#allocation159_spill] sm:$0xff]  ;;  %v5429_v59 = vld [vmem:[#allocation182_spill] sm:$0xff] }
 0x1df   :  { %v2417_v22 = vpack.c.bf16 %v5391_v63, %v5390_v62  ;;  %v5431_v62 = vld [vmem:[#allocation187_spill] sm:$0xff] }
 0x1e1   :  { %2376 = vmatpush1.bf16.msra.mxu1 %v2375_v37  ;;  %2308 = vmatpush1.bf16.msra.mxu0 %v2307_v15  ;;  %v2395_v37 = vpack.c.bf16 %v5367_v36, %v5366_v9  ;;  %v5396_v15 = vld [vmem:[#allocation148_spill] sm:$0xff]  ;;  %v5407_v9 = vld [vmem:[#allocation163_spill] sm:$0xff] }
 0x1e2   :  { %2378 = vmatprep.subr.bf16.mxu1 %v2377_v53  ;;  %2310 = vmatprep.subr.bf16.mxu0 %v2309_v10  ;;  %v2315_v53 = vpack.c.bf16 %v5371_v52, %v5370_v57  ;;  %v2423_v32 = vpack.c.bf16 %v5397_v28, %v5396_v15  ;;  %v5398_v10 = vld [vmem:[#allocation153_spill] sm:$0xff]  ;;  %v5411_v57 = vld [vmem:[#allocation167_spill] sm:$0xff] }
 0x1e3   :  { %v5438_v15 = vld [vmem:[#allocation193_spill] sm:$0xff]  ;;  %v5439_v28 = vld [vmem:[#allocation195_spill] sm:$0xff] }
 0x1e5   :  { %2380 = vmatpush1.bf16.msra.mxu1 %v2379_v40  ;;  %2312 = vmatpush1.bf16.msra.mxu0 %v2311_v25  ;;  %v2401_v40 = vpack.c.bf16 %v5375_v45, %v5374_v44  ;;  %v5404_v25 = vld [vmem:[#allocation156_spill] sm:$0xff]  ;;  %v5415_v44 = vld [vmem:[#allocation171_spill] sm:$0xff] }
 0x1e6   :  { %2382 = vmatprep.subr.bf16.mxu1 %v2381_v2  ;;  %2314 = vmatprep.subr.bf16.mxu0 %v2313_v11  ;;  %v2405_v2 = vpack.c.bf16 %v5379_v0, %v5378_v3  ;;  %v2431_v14 = vpack.c.bf16 %v5405_v12, %v5404_v25  ;;  %v5406_v11 = vld [vmem:[#allocation161_spill] sm:$0xff]  ;;  %v5419_v3 = vld [vmem:[#allocation175_spill] sm:$0xff] }
 0x1e7   :  { %v2433_v36 = vpack.c.bf16 %v5407_v9, %v5406_v11  ;;  %v5446_v25 = vld [vmem:[#allocation201_spill] sm:$0xff]  ;;  %v5447_v12 = vld [vmem:[#allocation203_spill] sm:$0xff]  ;;  %v5448_v11 = vld [vmem:[#allocation200_spill] sm:$0xff] }
 0x1e8   :  { %1480 = vmatmul.mubr.f32.vlgmr.msra.gmra.mrb[0].mxu1 %v4427_v30  ;;  %v5358_v30 = vld [vmem:[#allocation116_spill] sm:$0xff]  ;;  %v5449_v9 = vld [vmem:[#allocation202_spill] sm:$0xff] }
 0x1e9   :  { %2384 = vmatpush1.bf16.msra.mxu1 %v2383_v43  ;;  %1550 = vmatprep.mubr.f32.mxu1 %v4423_v19  ;;  %v2391_v27 = vpack.c.bf16 %v5359_v35, %v5358_v30  ;;  %v2393_v19 = vpack.c.bf16 %v5361_v21, %v5360_v20  ;;  %v2409_v43 = vpack.c.bf16 %v5383_v42, %v5382_v50  ;;  %v5399_v30 = vld [vmem:[#allocation155_spill] sm:$0xff]  ;;  %v5401_v20 = vld [vmem:[#allocation154_spill] sm:$0xff] }
 0x1ea   :  { %2386 = vmatprep.subr.bf16.mxu1 %v2385_v6  ;;  %2316 = vmatpush1.bf16.msra.mxu0 %v2315_v53  ;;  %v2411_v6 = vpack.c.bf16 %v5385_v4, %v5384_v51  ;;  %v2425_v35 = vpack.c.bf16 %v5399_v30, %v5398_v10  ;;  %v5412_v53 = vld [vmem:[#allocation164_spill] sm:$0xff]  ;;  %v5423_v50 = vld [vmem:[#allocation179_spill] sm:$0xff]  ;;  %v5425_v51 = vld [vmem:[#allocation178_spill] sm:$0xff] }
 0x1eb   :  { %v2439_v48 = vpack.c.bf16 %v5413_v54, %v5412_v53  ;;  %v5440_v10 = vld [vmem:[#allocation192_spill] sm:$0xff]  ;;  %v5441_v30 = vld [vmem:[#allocation194_spill] sm:$0xff]  ;;  %v5454_v53 = vld [vmem:[#allocation209_spill] sm:$0xff] }
 0x1ec   :  { %v5455_v54 = vld [vmem:[#allocation211_spill] sm:$0xff] }
 0x1ed   :  { %2388 = vmatpush1.bf16.msra.mxu1 %v2387_v23  ;;  %1409 = vmatmul.mubr.f32.vlgmr.msra.gmra.mrb[14].mxu0 %v4419_v8  ;;  %v2413_v8 = vpack.c.bf16 %v5387_v58, %v5386_v55  ;;  %v5392_v23 = vld [vmem:[#allocation144_spill] sm:$0xff]  ;;  %v5427_v55 = vld [vmem:[#allocation183_spill] sm:$0xff] }
 0x1ee   :  { %2390 = vmatprep.subr.bf16.mxu1 %v2389_v18  ;;  %v2419_v16 = vpack.c.bf16 %v5393_v24, %v5392_v23  ;;  %v5394_v18 = vld [vmem:[#allocation149_spill] sm:$0xff] }
 0x1ef   :  { %v2421_v17 = vpack.c.bf16 %v5395_v34, %v5394_v18  ;;  %v5434_v24 = vld [vmem:[#allocation189_spill] sm:$0xff]  ;;  %v5436_v18 = vld [vmem:[#allocation188_spill] sm:$0xff]  ;;  %v5437_v34 = vld [vmem:[#allocation190_spill] sm:$0xff] }
 0x1f1   :  { %2392 = vmatpush1.bf16.msra.mxu1 %v2391_v27  ;;  %v5400_v27 = vld [vmem:[#allocation152_spill] sm:$0xff] }
 0x1f2   :  { %2394 = vmatprep.subr.bf16.mxu1 %v2393_v19  ;;  %v2427_v21 = vpack.c.bf16 %v5401_v20, %v5400_v27  ;;  %v5402_v19 = vld [vmem:[#allocation157_spill] sm:$0xff]  ;;  %v5443_v20 = vld [vmem:[#allocation199_spill] sm:$0xff] }
 0x1f3   :  { %v2429_v29 = vpack.c.bf16 %v5403_v26, %v5402_v19  ;;  %v5442_v27 = vld [vmem:[#allocation197_spill] sm:$0xff]  ;;  %v5444_v19 = vld [vmem:[#allocation196_spill] sm:$0xff]  ;;  %v5445_v26 = vld [vmem:[#allocation198_spill] sm:$0xff] }
 0x1f5   :  { %2396 = vmatpush1.bf16.msra.mxu1 %v2395_v37  ;;  %v5408_v37 = vld [vmem:[#allocation160_spill] sm:$0xff] }
 0x1f6   :  { %2398 = vmatprep.subr.bf16.mxu1 %v2397_v56  ;;  %v2435_v39 = vpack.c.bf16 %v5409_v38, %v5408_v37  ;;  %v5410_v56 = vld [vmem:[#allocation165_spill] sm:$0xff]  ;;  %v5451_v38 = vld [vmem:[#allocation207_spill] sm:$0xff] }
 0x1f7   :  { %v2437_v52 = vpack.c.bf16 %v5411_v57, %v5410_v56  ;;  %v5450_v37 = vld [vmem:[#allocation205_spill] sm:$0xff]  ;;  %v5452_v56 = vld [vmem:[#allocation204_spill] sm:$0xff]  ;;  %v5453_v57 = vld [vmem:[#allocation206_spill] sm:$0xff] }
 0x1f9   :  { %2400 = vmatpush1.bf16.msra.mxu1 %v2399_v49  ;;  %v5414_v49 = vld [vmem:[#allocation169_spill] sm:$0xff] }
 0x1fa   :  { %2402 = vmatprep.subr.bf16.mxu1 %v2401_v40  ;;  %v2441_v45 = vpack.c.bf16 %v5415_v44, %v5414_v49  ;;  %v5416_v40 = vld [vmem:[#allocation168_spill] sm:$0xff]  ;;  %v5457_v44 = vld [vmem:[#allocation210_spill] sm:$0xff] }
 0x1fb   :  { %v2443_v46 = vpack.c.bf16 %v5417_v41, %v5416_v40  ;;  %v5456_v49 = vld [vmem:[#allocation208_spill] sm:$0xff]  ;;  %v5458_v40 = vld [vmem:[#allocation213_spill] sm:$0xff]  ;;  %v5459_v41 = vld [vmem:[#allocation215_spill] sm:$0xff] }
 0x1fd   :  { %2404 = vmatpush1.bf16.msra.mxu1 %v2403_v1  ;;  %v5418_v1 = vld [vmem:[#allocation173_spill] sm:$0xff] }
 0x1fe   :  { %2406 = vmatprep.subr.bf16.mxu1 %v2405_v2  ;;  %v2445_v0 = vpack.c.bf16 %v5419_v3, %v5418_v1  ;;  %v5420_v2 = vld [vmem:[#allocation172_spill] sm:$0xff]  ;;  %v5461_v3 = vld [vmem:[#allocation214_spill] sm:$0xff] }
 0x1ff   :  { %v2447_v7 = vpack.c.bf16 %v5421_v5, %v5420_v2  ;;  %v5460_v1 = vld [vmem:[#allocation212_spill] sm:$0xff]  ;;  %v5462_v2 = vld [vmem:[#allocation217_spill] sm:$0xff]  ;;  %v5463_v5 = vld [vmem:[#allocation219_spill] sm:$0xff] }
 0x201   :  { %2408 = vmatpush1.bf16.msra.mxu1 %v2407_v47  ;;  %v5422_v47 = vld [vmem:[#allocation177_spill] sm:$0xff] }
 0x202   :  { %2410 = vmatprep.subr.bf16.mxu1 %v2409_v43  ;;  %v2449_v42 = vpack.c.bf16 %v5423_v50, %v5422_v47  ;;  %v5424_v43 = vld [vmem:[#allocation176_spill] sm:$0xff]  ;;  %v5465_v50 = vld [vmem:[#allocation218_spill] sm:$0xff] }
 0x203   :  { %v2451_v4 = vpack.c.bf16 %v5425_v51, %v5424_v43  ;;  %v5464_v47 = vld [vmem:[#allocation216_spill] sm:$0xff]  ;;  %v5466_v43 = vld [vmem:[#allocation221_spill] sm:$0xff]  ;;  %v5467_v51 = vld [vmem:[#allocation223_spill] sm:$0xff] }
 0x205   :  { %2412 = vmatpush1.bf16.msra.mxu1 %v2411_v6  ;;  %v5426_v6 = vld [vmem:[#allocation181_spill] sm:$0xff] }
 0x206   :  { %2414 = vmatprep.subr.bf16.mxu1 %v2413_v8  ;;  %v2453_v58 = vpack.c.bf16 %v5427_v55, %v5426_v6  ;;  %v5428_v8 = vld [vmem:[#allocation180_spill] sm:$0xff]  ;;  %v5469_v55 = vld [vmem:[#allocation222_spill] sm:$0xff] }
 0x207   :  { %v2455_v60 = vpack.c.bf16 %v5429_v59, %v5428_v8  ;;  %v5468_v6 = vld [vmem:[#allocation220_spill] sm:$0xff]  ;;  %v5470_v8 = vld [vmem:[#allocation225_spill] sm:$0xff]  ;;  %v5471_v59 = vld [vmem:[#allocation227_spill] sm:$0xff] }
 0x209   :  { %2416 = vmatpush1.bf16.msra.mxu1 %v2415_v61  ;;  %v5430_v61 = vld [vmem:[#allocation185_spill] sm:$0xff] }
 0x20a   :  { %2418 = vmatprep.subr.bf16.mxu1 %v2417_v22  ;;  %v2457_v63 = vpack.c.bf16 %v5431_v62, %v5430_v61  ;;  %v5433_v22 = vld [vmem:[#allocation186_spill] sm:$0xff]  ;;  %v5472_v61 = vld [vmem:[#allocation224_spill] sm:$0xff] }
 0x20b   :  { %v5473_v62 = vld [vmem:[#allocation226_spill] sm:$0xff] }
 0x20d   :  { %2420 = vmatpush1.bf16.msra.mxu1 %v2419_v16  ;;  %v5435_v16 = vld [vmem:[#allocation191_spill] sm:$0xff] }
 0x20e   :  { %2422 = vmatprep.subr.bf16.mxu1 %v2421_v17  ;;  %v2463_v17 = vpack.c.bf16 %v5437_v34, %v5436_v18  ;;  %v5478_v18 = vld [vmem:[#allocation233_spill] sm:$0xff]  ;;  %v5479_v34 = vld [vmem:[#allocation235_spill] sm:$0xff] }
 0x211   :  { %2424 = vmatpush1.bf16.msra.mxu1 %v2423_v32  ;;  %v2465_v32 = vpack.c.bf16 %v5439_v28, %v5438_v15  ;;  %v5480_v15 = vld [vmem:[#allocation232_spill] sm:$0xff]  ;;  %v5481_v28 = vld [vmem:[#allocation234_spill] sm:$0xff] }
 0x212   :  { %2426 = vmatprep.subr.bf16.mxu1 %v2425_v35  ;;  %v2467_v35 = vpack.c.bf16 %v5441_v30, %v5440_v10 }
 0x215   :  { %2428 = vmatpush1.bf16.msra.mxu1 %v2427_v21  ;;  %v2469_v21 = vpack.c.bf16 %v5443_v20, %v5442_v27 }
 0x216   :  { %2430 = vmatprep.subr.bf16.mxu1 %v2429_v29  ;;  %v2471_v29 = vpack.c.bf16 %v5445_v26, %v5444_v19 }
 0x219   :  { %2432 = vmatpush1.bf16.msra.mxu1 %v2431_v14  ;;  %v2473_v14 = vpack.c.bf16 %v5447_v12, %v5446_v25 }
 0x21a   :  { %2434 = vmatprep.subr.bf16.mxu1 %v2433_v36  ;;  %v2475_v36 = vpack.c.bf16 %v5449_v9, %v5448_v11 }
 0x21d   :  { %2436 = vmatpush1.bf16.msra.mxu1 %v2435_v39  ;;  %v2477_v39 = vpack.c.bf16 %v5451_v38, %v5450_v37 }
 0x21e   :  { %2438 = vmatprep.subr.bf16.mxu1 %v2437_v52  ;;  %v2479_v52 = vpack.c.bf16 %v5453_v57, %v5452_v56 }
 0x221   :  { %2440 = vmatpush1.bf16.msra.mxu1 %v2439_v48  ;;  %v2481_v48 = vpack.c.bf16 %v5455_v54, %v5454_v53 }
 0x222   :  { %2442 = vmatprep.subr.bf16.mxu1 %v2441_v45  ;;  %v2483_v45 = vpack.c.bf16 %v5457_v44, %v5456_v49 }
 0x225   :  { %2444 = vmatpush1.bf16.msra.mxu1 %v2443_v46  ;;  %v2485_v46 = vpack.c.bf16 %v5459_v41, %v5458_v40 }
 0x226   :  { %2446 = vmatprep.subr.bf16.mxu1 %v2445_v0  ;;  %v2487_v0 = vpack.c.bf16 %v5461_v3, %v5460_v1 }
 0x228   :  { %1551 = vmatmul.mubr.f32.vlgmr.msra.gmra.mrb[0].mxu1 %v4430_v13  ;;  %v5432_v13 = vld [vmem:[#allocation184_spill] sm:$0xff] }
 0x229   :  { %2448 = vmatpush1.bf16.msra.mxu1 %v2447_v7  ;;  %1621 = vmatprep.mubr.f32.mxu1 %v4438_v31  ;;  %v2459_v23 = vpack.c.bf16 %v5433_v22, %v5432_v13  ;;  %v2461_v31 = vpack.c.bf16 %v5435_v16, %v5434_v24  ;;  %v2489_v7 = vpack.c.bf16 %v5463_v5, %v5462_v2  ;;  %v5474_v13 = vld [vmem:[#allocation229_spill] sm:$0xff]  ;;  %v5475_v22 = vld [vmem:[#allocation231_spill] sm:$0xff]  ;;  %v5476_v24 = vld [vmem:[#allocation228_spill] sm:$0xff] }
 0x22a   :  { %2450 = vmatprep.subr.bf16.mxu1 %v2449_v42  ;;  %v2491_v42 = vpack.c.bf16 %v5465_v50, %v5464_v47  ;;  %v5477_v16 = vld [vmem:[#allocation230_spill] sm:$0xff] }
 0x22d   :  { %2452 = vmatpush1.bf16.msra.mxu1 %v2451_v4  ;;  %v2493_v4 = vpack.c.bf16 %v5467_v51, %v5466_v43 }
 0x22e   :  { %2454 = vmatprep.subr.bf16.mxu1 %v2453_v58  ;;  %v2495_v58 = vpack.c.bf16 %v5469_v55, %v5468_v6 }
 0x231   :  { %2456 = vmatpush1.bf16.msra.mxu1 %v2455_v60  ;;  %v2497_v60 = vpack.c.bf16 %v5471_v59, %v5470_v8  ;;  %v5482_v59 = vld [vmem:[#allocation237_spill] sm:$0xff] }
 0x232   :  { %2458 = vmatprep.subr.bf16.mxu1 %v2457_v63  ;;  %v2499_v63 = vpack.c.bf16 %v5473_v62, %v5472_v61  ;;  %v5484_v62 = vld [vmem:[#allocation236_spill] sm:$0xff] }
 0x235   :  { %2460 = vmatpush1.bf16.msra.mxu1 %v2459_v23  ;;  %v2501_v23 = vpack.c.bf16 %v5475_v22, %v5474_v13  ;;  %v5486_v22 = vld [vmem:[#allocation241_spill] sm:$0xff] }
 0x236   :  { %2462 = vmatprep.subr.bf16.mxu1 %v2461_v31  ;;  %v2503_v31 = vpack.c.bf16 %v5477_v16, %v5476_v24 }
 0x239   :  { %2464 = vmatpush1.bf16.msra.mxu1 %v2463_v17  ;;  %v2505_v17 = vpack.c.bf16 %v5479_v34, %v5478_v18 }
 0x23a   :  { %2466 = vmatprep.subr.bf16.mxu1 %v2465_v32  ;;  %v2507_v32 = vpack.c.bf16 %v5481_v28, %v5480_v15 }
 0x23d   :  { %2468 = vmatpush1.bf16.msra.mxu1 %v2467_v35 }
 0x23e   :  { %2470 = vmatprep.subr.bf16.mxu1 %v2469_v21  ;;  %v1661_v21 = vlaneseq }
 0x240   :  { %v4704_v37 = vshrl.u32 %v1661_v21, 7 }
 0x241   :  { %2472 = vmatpush1.bf16.msra.mxu1 %v2471_v29 }
 0x242   :  { %2474 = vmatprep.subr.bf16.mxu1 %v2473_v14  ;;  %v1667_v40 = vsub.s32 1, %v4704_v37 }
 0x245   :  { %2476 = vmatpush1.bf16.msra.mxu1 %v2475_v36 }
 0x246   :  { %2478 = vmatprep.subr.bf16.mxu1 %v2477_v39 }
 0x249   :  { %2480 = vmatpush1.bf16.msra.mxu1 %v2479_v52 }
 0x24a   :  { %2482 = vmatprep.subr.bf16.mxu1 %v2481_v48  ;;  %v1663_v48 = vsub.s32 0, %v4704_v37 }
 0x24d   :  { %2484 = vmatpush1.bf16.msra.mxu1 %v2483_v45  ;;  %v1659_v45 = vld [vmem:[%s4962_s4] sm:$0x3] }
 0x24e   :  { %2486 = vmatprep.subr.bf16.mxu1 %v2485_v46  ;;  %v1664_v5 = vrot.slane %v1659_v45, %v1663_v48  ;;  %v1668_v50 = vrot.slane %v1659_v45, %v1667_v40 }
 0x251   :  { %2488 = vmatpush1.bf16.msra.mxu1 %v2487_v0 }
 0x252   :  { %2490 = vmatprep.subr.bf16.mxu1 %v2489_v7 }
 0x255   :  { %2492 = vmatpush1.bf16.msra.mxu1 %v2491_v42 }
 0x256   :  { %2494 = vmatprep.subr.bf16.mxu1 %v2493_v4 }
 0x259   :  { %2496 = vmatpush1.bf16.msra.mxu1 %v2495_v58 }
 0x25a   :  { %2498 = vmatprep.subr.bf16.mxu1 %v2497_v60  ;;  %v5483_v60 = vld [vmem:[#allocation239_spill] sm:$0xff] }
 0x25b   :  { %v2509_v61 = vpack.c.bf16 %v5483_v60, %v5482_v59 }
 0x25d   :  { %2500 = vmatpush1.bf16.msra.mxu1 %v2499_v63  ;;  %v5485_v63 = vld [vmem:[#allocation238_spill] sm:$0xff] }
 0x25e   :  { %2502 = vmatprep.subr.bf16.mxu1 %v2501_v23  ;;  %v2511_v13 = vpack.c.bf16 %v5485_v63, %v5484_v62  ;;  %v5487_v23 = vld [vmem:[#allocation243_spill] sm:$0xff] }
 0x25f   :  { %v2513_v24 = vpack.c.bf16 %v5487_v23, %v5486_v22 }
 0x261   :  { %2504 = vmatpush1.bf16.msra.mxu1 %v2503_v31 }
 0x262   :  { %2506 = vmatprep.subr.bf16.mxu1 %v2505_v17 }
 0x265   :  { %2508 = vmatpush1.bf16.msra.mxu1 %v2507_v32 }
 0x268   :  { %1622 = vmatmul.mubr.f32.vlgmr.msra.gmra.mrb[0].mxu1 %v4433_v33 }
 0x2c0   :  { %v1410_v10 = vpop.f32.mrb[14].mxu0 }
 0x2c1   :  { %v1412_v30 = vpop.f32.mrb[15].mxu0 }
 0x33b   :  { %v1623_v35 = vpop.f32.mrb[0].mxu1 }
 0x33c   :  { %v2629_v27 = vadd.f32 %v1623_v35, %v1410_v10  ;;  %v1625_v20 = vpop.f32.mrb[1].mxu1 }
 0x33d   :  { %v2630_v19 = vadd.f32 %v1625_v20, %v1412_v30 }
 0x33e   :  { %v1628_v26 = vsel %vm956_vm1, %v2629_v27, -inf  ;;  %v1643_v29 = vsel %vm1642_vm7, %v2629_v27, -inf }
 0x33f   :  { %v1629_v25 = vrot.slane %v1628_v26, 4  ;;  %v1644_v12 = vrot.slane %v1643_v29, 4  ;;  %v1635_v14 = vsel %vm956_vm1, %v2630_v19, -inf  ;;  %v1650_v11 = vsel %vm1642_vm7, %v2630_v19, -inf }
 0x340   :  { %v1636_v9 = vrot.slane %v1635_v14, 4  ;;  %v1651_v36 = vrot.slane %v1650_v11, 4 }
 0x341   :  { %v1630_v33 = vmax.f32 %v1628_v26, %v1629_v25  ;;  %v1645_v38 = vmax.f32 %v1643_v29, %v1644_v12 }
 0x342   :  { %v1637_v39 = vmax.f32 %v1635_v14, %v1636_v9  ;;  %v1652_v56 = vmax.f32 %v1650_v11, %v1651_v36 }
 0x343   :  { %v1631_v57 = vrot.slane %v1630_v33, 2  ;;  %v1646_v52 = vrot.slane %v1645_v38, 2 }
 0x344   :  { %v1638_v53 = vrot.slane %v1637_v39, 2  ;;  %v1653_v54 = vrot.slane %v1652_v56, 2 }
 0x345   :  { %v1632_v49 = vmax.f32 %v1630_v33, %v1631_v57  ;;  %v1647_v44 = vmax.f32 %v1645_v38, %v1646_v52 }
 0x346   :  { %v1639_v41 = vmax.f32 %v1637_v39, %v1638_v53  ;;  %v1654_v46 = vmax.f32 %v1652_v56, %v1653_v54 }
 0x347   :  { %v1633_v1 = vrot.slane %v1632_v49, 1  ;;  %v1648_v3 = vrot.slane %v1647_v44, 1 }
 0x348   :  { %v1640_v0 = vrot.slane %v1639_v41, 1  ;;  %v1655_v2 = vrot.slane %v1654_v46, 1 }
 0x349   :  { %v1634_v7 = vmax.f32 %v1632_v49, %v1633_v1  ;;  %v1649_v47 = vmax.f32 %v1647_v44, %v1648_v3 }
 0x34a   :  { %v1641_v42 = vmax.f32 %v1639_v41, %v1640_v0  ;;  %v1656_v43 = vmax.f32 %v1654_v46, %v1655_v2 }
 0x34b   :  { %v1657_v51 = vsel %vm1030_vm4, %v1634_v7, %v1649_v47 }
 0x34c   :  { %v1658_v4 = vsel %vm1030_vm4, %v1641_v42, %v1656_v43  ;;  %v4717_v6 = vadd.f32 %v1664_v5, %v1657_v51 }
 0x34d   :  { %v1672_v55 = vadd.f32 %v1668_v50, %v1658_v4 }
 0x34e   :  { %v1673_v58 = vmax.f32 %v4717_v6, 0.0 }
 0x34f   :  { %v1674_v8 = vmax.f32 %v1672_v55, 0.0 }
 0x351   :  { %1819 = vmatprep.mubr.f32.mxu0 %v1674_v8 }
 0x352   :  { %2667 = dma.done.wait [#allocation4 + $0x1], 8192 }
 0x353   :  { %2668 = vsyncadd [#allocation4 + $0x1], 4294959104  ;;  %2510 = vmatprep.subr.bf16.mxu0 %v2509_v61  ;;  %v5488_v16 = vld [vmem:[#allocation240_spill] sm:$0xff]  ;;  %v5489_v31 = vld [vmem:[#allocation242_spill] sm:$0xff]  ;;  %vm2672_vm8 = vmmov 0   ;;  %vm2032_vm9 = vcmask 74752  }
 0x354   :  { %2512 = vmatpush1.bf16.msra.mxu0 %v2511_v13  ;;  %v2515_v18 = vpack.c.bf16 %v5489_v31, %v5488_v16  ;;  %v5490_v34 = vld [vmem:[#allocation245_spill] sm:$0xff]  ;;  %v5491_v17 = vld [vmem:[#allocation247_spill] sm:$0xff]  ;;  %v5492_v28 = vld [vmem:[#allocation244_spill] sm:$0xff] }
 0x355   :  { %2514 = vmatprep.subr.bf16.mxu0 %v2513_v24  ;;  %v2517_v15 = vpack.c.bf16 %v5491_v17, %v5490_v34  ;;  %v5493_v32 = vld [vmem:[#allocation246_spill] sm:$0xff]  ;;  %v5494_v30 = vld [vmem:[#allocation249_spill] sm:$0xff]  ;;  %v5495_v35 = vld [vmem:[#allocation251_spill] sm:$0xff] }
 0x356   :  { %v2519_v10 = vpack.c.bf16 %v5493_v32, %v5492_v28  ;;  %v2521_v27 = vpack.c.bf16 %v5495_v35, %v5494_v30  ;;  %v5496_v20 = vld [vmem:[#allocation248_spill] sm:$0xff]  ;;  %v5497_v21 = vld [vmem:[#allocation250_spill] sm:$0xff]  ;;  %v5498_v26 = vld [vmem:[#allocation253_spill] sm:$0xff] }
 0x357   :  { %v2523_v19 = vpack.c.bf16 %v5497_v21, %v5496_v20  ;;  %v5499_v29 = vld [vmem:[#allocation255_spill] sm:$0xff]  ;;  %v5500_v12 = vld [vmem:[#allocation252_spill] sm:$0xff]  ;;  %v5501_v14 = vld [vmem:[#allocation254_spill] sm:$0xff] }
 0x358   :  { %2516 = vmatpush1.bf16.msra.mxu0 %v2515_v18  ;;  %v2525_v25 = vpack.c.bf16 %v5499_v29, %v5498_v26  ;;  %v2527_v11 = vpack.c.bf16 %v5501_v14, %v5500_v12  ;;  %v5502_v9 = vld [vmem:[#allocation257_spill] sm:$0xff]  ;;  %v5503_v36 = vld [vmem:[#allocation259_spill] sm:$0xff]  ;;  %v5504_v38 = vld [vmem:[#allocation256_spill] sm:$0xff] }
 0x359   :  { %2518 = vmatprep.subr.bf16.mxu0 %v2517_v15  ;;  %v2529_v33 = vpack.c.bf16 %v5503_v36, %v5502_v9  ;;  %v5505_v39 = vld [vmem:[#allocation258_spill] sm:$0xff]  ;;  %v5506_v57 = vld [vmem:[#allocation261_spill] sm:$0xff]  ;;  %v5507_v52 = vld [vmem:[#allocation263_spill] sm:$0xff] }
 0x35a   :  { %v2531_v56 = vpack.c.bf16 %v5505_v39, %v5504_v38  ;;  %v2533_v53 = vpack.c.bf16 %v5507_v52, %v5506_v57  ;;  %v5508_v54 = vld [vmem:[#allocation260_spill] sm:$0xff]  ;;  %v5509_v49 = vld [vmem:[#allocation262_spill] sm:$0xff]  ;;  %v5510_v45 = vld [vmem:[#allocation265_spill] sm:$0xff] }
 0x35b   :  { %v2535_v44 = vpack.c.bf16 %v5509_v49, %v5508_v54  ;;  %v5511_v41 = vld [vmem:[#allocation267_spill] sm:$0xff]  ;;  %v5512_v1 = vld [vmem:[#allocation264_spill] sm:$0xff]  ;;  %v5513_v3 = vld [vmem:[#allocation266_spill] sm:$0xff] }
 0x35c   :  { %2520 = vmatpush1.bf16.msra.mxu0 %v2519_v10  ;;  %v2537_v46 = vpack.c.bf16 %v5511_v41, %v5510_v45  ;;  %v2539_v0 = vpack.c.bf16 %v5513_v3, %v5512_v1  ;;  %v5514_v2 = vld [vmem:[#allocation269_spill] sm:$0xff]  ;;  %v5515_v5 = vld [vmem:[#allocation271_spill] sm:$0xff]  ;;  %v5516_v47 = vld [vmem:[#allocation268_spill] sm:$0xff] }
 0x35d   :  { %2522 = vmatprep.subr.bf16.mxu0 %v2521_v27  ;;  %v2541_v7 = vpack.c.bf16 %v5515_v5, %v5514_v2  ;;  %v5517_v50 = vld [vmem:[#allocation270_spill] sm:$0xff]  ;;  %v5518_v43 = vld [vmem:[#allocation273_spill] sm:$0xff]  ;;  %v5519_v51 = vld [vmem:[#allocation275_spill] sm:$0xff] }
 0x35e   :  { %v2543_v42 = vpack.c.bf16 %v5517_v50, %v5516_v47  ;;  %v2545_v4 = vpack.c.bf16 %v5519_v51, %v5518_v43  ;;  %v5520_v55 = vld [vmem:[#allocation272_spill] sm:$0xff]  ;;  %v5521_v8 = vld [vmem:[#allocation274_spill] sm:$0xff]  ;;  %v5522_v60 = vld [vmem:[#allocation277_spill] sm:$0xff] }
 0x35f   :  { %v2547_v59 = vpack.c.bf16 %v5521_v8, %v5520_v55  ;;  %v5523_v61 = vld [vmem:[#allocation279_spill] sm:$0xff]  ;;  %v5524_v63 = vld [vmem:[#allocation276_spill] sm:$0xff]  ;;  %v5525_v13 = vld [vmem:[#allocation278_spill] sm:$0xff] }
 0x360   :  { %2524 = vmatpush1.bf16.msra.mxu0 %v2523_v19  ;;  %v2549_v62 = vpack.c.bf16 %v5523_v61, %v5522_v60  ;;  %v2551_v22 = vpack.c.bf16 %v5525_v13, %v5524_v63  ;;  %v5526_v23 = vld [vmem:[#allocation281_spill] sm:$0xff]  ;;  %v5527_v24 = vld [vmem:[#allocation283_spill] sm:$0xff]  ;;  %v5528_v31 = vld [vmem:[#allocation280_spill] sm:$0xff] }
 0x361   :  { %2526 = vmatprep.subr.bf16.mxu0 %v2525_v25  ;;  %v2553_v16 = vpack.c.bf16 %v5527_v24, %v5526_v23  ;;  %v5529_v18 = vld [vmem:[#allocation282_spill] sm:$0xff]  ;;  %v5530_v17 = vld [vmem:[#allocation285_spill] sm:$0xff]  ;;  %v5531_v15 = vld [vmem:[#allocation287_spill] sm:$0xff] }
 0x362   :  { %v2555_v34 = vpack.c.bf16 %v5529_v18, %v5528_v31  ;;  %v2557_v28 = vpack.c.bf16 %v5531_v15, %v5530_v17  ;;  %v5532_v32 = vld [vmem:[#allocation284_spill] sm:$0xff]  ;;  %v5533_v10 = vld [vmem:[#allocation286_spill] sm:$0xff]  ;;  %v5534_v35 = vld [vmem:[#allocation289_spill] sm:$0xff] }
 0x363   :  { %v2559_v30 = vpack.c.bf16 %v5533_v10, %v5532_v32  ;;  %v5535_v27 = vld [vmem:[#allocation291_spill] sm:$0xff]  ;;  %v5536_v21 = vld [vmem:[#allocation288_spill] sm:$0xff]  ;;  %v5537_v19 = vld [vmem:[#allocation290_spill] sm:$0xff] }
 0x364   :  { %2528 = vmatpush1.bf16.msra.mxu0 %v2527_v11  ;;  %v2561_v20 = vpack.c.bf16 %v5535_v27, %v5534_v35  ;;  %v2563_v26 = vpack.c.bf16 %v5537_v19, %v5536_v21  ;;  %v5538_v29 = vld [vmem:[#allocation293_spill] sm:$0xff]  ;;  %v5539_v25 = vld [vmem:[#allocation295_spill] sm:$0xff]  ;;  %v5540_v14 = vld [vmem:[#allocation292_spill] sm:$0xff] }
 0x365   :  { %2530 = vmatprep.subr.bf16.mxu0 %v2529_v33  ;;  %v2565_v12 = vpack.c.bf16 %v5539_v25, %v5538_v29  ;;  %v5541_v11 = vld [vmem:[#allocation294_spill] sm:$0xff]  ;;  %v5542_v36 = vld [vmem:[#allocation297_spill] sm:$0xff]  ;;  %v5543_v33 = vld [vmem:[#allocation299_spill] sm:$0xff] }
 0x366   :  { %v2567_v9 = vpack.c.bf16 %v5541_v11, %v5540_v14  ;;  %v2569_v38 = vpack.c.bf16 %v5543_v33, %v5542_v36  ;;  %v1844_v39 = vld [vmem:[%s4965_s7 + $0x80] sm:$0xff]  ;;  %v5545_v52 = vld [vmem:[#allocation298_spill] sm:$0xff]  ;;  %v1849_v5 = vld [vmem:[%s4965_s7 + $0xa8] sm:$0xff] }
 0x367   :  { %v5544_v57 = vld [vmem:[#allocation296_spill] sm:$0xff]  ;;  %v1846_v45 = vld [vmem:[%s4965_s7 + $0x90] sm:$0xff]  ;;  %v1847_v41 = vld [vmem:[%s4965_s7 + $0x98] sm:$0xff] }
 0x368   :  { %2532 = vmatpush1.bf16.msra.mxu0 %v2531_v56  ;;  %v1845_v56 = vld [vmem:[%s4965_s7 + $0x88] sm:$0xff]  ;;  %v1828_v49 = vld [vmem:[%s4965_s7] sm:$0xff]  ;;  %v2577_v1 = vpack.c.bf16 %v1847_v41, %v1846_v45  ;;  %v1830_v3 = vld [vmem:[%s4965_s7 + $0x10] sm:$0xff] }
 0x369   :  { %2534 = vmatprep.subr.bf16.mxu0 %v2533_v53  ;;  %v2571_v53 = vpack.c.bf16 %v5545_v52, %v5544_v57  ;;  %v2573_v54 = vpack.c.bf16 %v1845_v56, %v1844_v39  ;;  %v1848_v2 = vld [vmem:[%s4965_s7 + $0xa0] sm:$0xff]  ;;  %v1850_v43 = vld [vmem:[%s4965_s7 + $0xb0] sm:$0xff]  ;;  %v1851_v6 = vld [vmem:[%s4965_s7 + $0xb8] sm:$0xff] }
 0x36a   :  { %v2581_v47 = vpack.c.bf16 %v1849_v5, %v1848_v2  ;;  %v1832_v50 = vld [vmem:[%s4965_s7 + $0x20] sm:$0xff]  ;;  %v2585_v51 = vpack.c.bf16 %v1851_v6, %v1850_v43  ;;  %v1835_v55 = vld [vmem:[%s4965_s7 + $0x38] sm:$0xff]  ;;  %v1837_v63 = vld [vmem:[%s4965_s7 + $0x48] sm:$0xff]  ;;  %v2673_v6 = vmov 0.0  }
 0x36b   :  { %v1852_v8 = vld [vmem:[%s4965_s7 + $0xc0] sm:$0xff]  ;;  %v1854_v13 = vld [vmem:[%s4965_s7 + $0xd0] sm:$0xff]  ;;  %v1839_v31 = vld [vmem:[%s4965_s7 + $0x58] sm:$0xff] }
 0x36c   :  { %2536 = vmatpush1.bf16.msra.mxu0 %v2535_v44  ;;  %v1829_v44 = vld [vmem:[%s4965_s7 + $0x8] sm:$0xff]  ;;  %v1856_v18 = vld [vmem:[%s4965_s7 + $0xe0] sm:$0xff]  ;;  %v1859_v35 = vld [vmem:[%s4965_s7 + $0xf8] sm:$0xff] }
 0x36d   :  { %2538 = vmatprep.subr.bf16.mxu0 %v2537_v46  ;;  %v2575_v46 = vpack.c.bf16 %v1829_v44, %v1828_v49  ;;  %v1841_v32 = vld [vmem:[%s4965_s7 + $0x68] sm:$0xff]  ;;  %v1843_v21 = vld [vmem:[%s4965_s7 + $0x78] sm:$0xff]  ;;  %v1743_v29 = vld [vmem:[%s4964_s6] sm:$0x3] }
 0x36e   :  { %v1748_v25 = vrot.slane %v1743_v29, %v1663_v48  ;;  %v1938_v36 = vld [vmem:[%s4967_s9] sm:$0xff]  ;;  %v1939_v33 = vld [vmem:[%s4967_s9 + $0x8] sm:$0xff]  ;;  %v1940_v37 = vld [vmem:[%s4967_s9 + $0x10] sm:$0xff] }
 0x36f   :  { %v2606_v56 = vpack.c.bf16 %v1939_v33, %v1938_v36  ;;  %v1941_v48 = vld [vmem:[%s4967_s9 + $0x18] sm:$0xff]  ;;  %v1942_v52 = vld [vmem:[%s4967_s9 + $0x20] sm:$0xff]  ;;  %v1944_v49 = vld [vmem:[%s4967_s9 + $0x30] sm:$0xff] }
 0x370   :  { %2540 = vmatpush1.bf16.msra.mxu0 %v2539_v0  ;;  %v1831_v0 = vld [vmem:[%s4965_s7 + $0x18] sm:$0xff]  ;;  %v1946_v41 = vld [vmem:[%s4967_s9 + $0x40] sm:$0xff] }
 0x371   :  { %2542 = vmatprep.subr.bf16.mxu0 %v2541_v7  ;;  %v2579_v7 = vpack.c.bf16 %v1831_v0, %v1830_v3  ;;  %v1945_v44 = vld [vmem:[%s4967_s9 + $0x38] sm:$0xff]  ;;  %v1948_v3 = vld [vmem:[%s4967_s9 + $0x50] sm:$0xff]  ;;  %v1950_v5 = vld [vmem:[%s4967_s9 + $0x60] sm:$0xff] }
 0x372   :  { %v2615_v45 = vpack.c.bf16 %v1945_v44, %v1944_v49  ;;  %v1949_v0 = vld [vmem:[%s4967_s9 + $0x58] sm:$0xff] }
 0x373   :  { %v2621_v2 = vpack.c.bf16 %v1949_v0, %v1948_v3 }
 0x374   :  { %2544 = vmatpush1.bf16.msra.mxu0 %v2543_v42  ;;  %v1833_v42 = vld [vmem:[%s4965_s7 + $0x28] sm:$0xff] }
 0x375   :  { %2546 = vmatprep.subr.bf16.mxu0 %v2545_v4  ;;  %v1834_v4 = vld [vmem:[%s4965_s7 + $0x30] sm:$0xff] }
 0x376   :  { %v2587_v60 = vpack.c.bf16 %v1835_v55, %v1834_v4 }
 0x378   :  { %2548 = vmatpush1.bf16.msra.mxu0 %v2547_v59  ;;  %v1853_v59 = vld [vmem:[%s4965_s7 + $0xc8] sm:$0xff] }
 0x379   :  { %2550 = vmatprep.subr.bf16.mxu0 %v2549_v62  ;;  %v2589_v61 = vpack.c.bf16 %v1853_v59, %v1852_v8  ;;  %v1836_v62 = vld [vmem:[%s4965_s7 + $0x40] sm:$0xff] }
 0x37a   :  { %v2591_v23 = vpack.c.bf16 %v1837_v63, %v1836_v62 }
 0x37c   :  { %2552 = vmatpush1.bf16.msra.mxu0 %v2551_v22  ;;  %v1855_v22 = vld [vmem:[%s4965_s7 + $0xd8] sm:$0xff] }
 0x37d   :  { %2554 = vmatprep.subr.bf16.mxu0 %v2553_v16  ;;  %v2593_v24 = vpack.c.bf16 %v1855_v22, %v1854_v13  ;;  %v1838_v16 = vld [vmem:[%s4965_s7 + $0x50] sm:$0xff] }
 0x37e   :  { %v2595_v17 = vpack.c.bf16 %v1839_v31, %v1838_v16 }
 0x380   :  { %2556 = vmatpush1.bf16.msra.mxu0 %v2555_v34  ;;  %v1857_v34 = vld [vmem:[%s4965_s7 + $0xe8] sm:$0xff] }
 0x381   :  { %2558 = vmatprep.subr.bf16.mxu0 %v2557_v28  ;;  %v2597_v15 = vpack.c.bf16 %v1857_v34, %v1856_v18  ;;  %v1840_v28 = vld [vmem:[%s4965_s7 + $0x60] sm:$0xff] }
 0x382   :  { %v2599_v10 = vpack.c.bf16 %v1841_v32, %v1840_v28 }
 0x384   :  { %2560 = vmatpush1.bf16.msra.mxu0 %v2559_v30  ;;  %v1858_v30 = vld [vmem:[%s4965_s7 + $0xf0] sm:$0xff] }
 0x385   :  { %2562 = vmatprep.subr.bf16.mxu0 %v2561_v20  ;;  %v2601_v27 = vpack.c.bf16 %v1859_v35, %v1858_v30  ;;  %v1842_v20 = vld [vmem:[%s4965_s7 + $0x70] sm:$0xff] }
 0x386   :  { %v2603_v19 = vpack.c.bf16 %v1843_v21, %v1842_v20 }
 0x388   :  { %2564 = vmatpush1.bf16.msra.mxu0 %v2563_v26  ;;  %v2671_v26 = vmov 0.0|0.0  }
 0x389   :  { %2566 = vmatprep.subr.bf16.mxu0 %v2565_v12  ;;  %v1752_v12 = vrot.slane %v1743_v29, %v1667_v40  ;;  %v2609_v40 = vpack.c.bf16 %v1941_v48, %v1940_v37 }
 0x38c   :  { %2568 = vmatpush1.bf16.msra.mxu0 %v2567_v9 }
 0x38d   :  { %2570 = vmatprep.subr.bf16.mxu0 %v2569_v38 }
 0x390   :  { %2572 = vmatpush1.bf16.msra.mxu0 %v2571_v53  ;;  %v1943_v53 = vld [vmem:[%s4967_s9 + $0x28] sm:$0xff] }
 0x391   :  { %2574 = vmatprep.subr.bf16.mxu0 %v2573_v54  ;;  %v2612_v54 = vpack.c.bf16 %v1943_v53, %v1942_v52 }
 0x393   :  { %1820 = vmatmul.mubr.f32.vlgmr.msra.gmra.mrb[16].mxu0 %v1673_v58  ;;  %v2583_v58 = vpack.c.bf16 %v1833_v42, %v1832_v50  ;;  %v1952_v50 = vld [vmem:[%s4967_s9 + $0x70] sm:$0xff]  ;;  %v1953_v42 = vld [vmem:[%s4967_s9 + $0x78] sm:$0xff] }
 0x394   :  { %2576 = vmatpush3.bf16.msra.mxu0 %v2575_v46  ;;  %v1947_v46 = vld [vmem:[%s4967_s9 + $0x48] sm:$0xff]  ;;  %v2627_v43 = vpack.c.bf16 %v1953_v42, %v1952_v50 }
 0x395   :  { %2578 = vmatprep.subr.bf16.mxu0 %v2577_v1  ;;  %v2618_v1 = vpack.c.bf16 %v1947_v46, %v1946_v41 }
 0x398   :  { %2580 = vmatpush3.bf16.msra.mxu0 %v2579_v7  ;;  %v1951_v7 = vld [vmem:[%s4967_s9 + $0x68] sm:$0xff] }
 0x399   :  { %2582 = vmatprep.subr.bf16.mxu0 %v2581_v47  ;;  %v2624_v47 = vpack.c.bf16 %v1951_v7, %v1950_v5 }
 0x39c   :  { %2584 = vmatpush3.bf16.msra.mxu0 %v2583_v58 }
 0x39d   :  { %2586 = vmatprep.subr.bf16.mxu0 %v2585_v51  ;;  %v2107_v51 = vld [vmem:[%s4966_s8] ss:$0 sm:$0xff]  ;;  %s2674_s8 = smov [#allocation5]  }
 0x39e   :  { %s2051_s9 = sshll.u32 %s2674_s8, 4  ;;  %s2052_s9 = int_to_ptr.vmem [resolvable:$true] %s2051_s9 }
 0x39f   :  { %p2648_p1 = scmp.lt.s32.totalorder %s2052_s9, %s2052_s9 }
 0x3a0   :  { %2588 = vmatpush3.bf16.msra.mxu0 %v2587_v60  ;;  %v2108_v60 = vld [vmem:[%s4968_s10] ss:$0 sm:$0xff]  ;;  %s2643_s10 = scalar_lea.vmem %s2052_s9, 32 }
 0x3a1   :  { %2590 = vmatprep.subr.bf16.mxu0 %v2589_v61  ;;  %p2644_p0 = scmp.ne.s32.totalorder %s2052_s9, %s2643_s10  ;;  %p2649_p2 = scmp.lt.s32.totalorder %s2643_s10, %s2643_s10 }
 0x3a3   :  { %p2650_p3 = por %p2649_p2, %p2648_p1 }
 0x3a4   :  { %2592 = vmatpush3.bf16.msra.mxu0 %v2591_v23 }
 0x3a5   :  { %2594 = vmatprep.subr.bf16.mxu0 %v2593_v24  ;;  %p2651_p4 = pnand %p2650_p3, %p2644_p0 }
 0x3a8   :  { %2596 = vmatpush3.bf16.msra.mxu0 %v2595_v17 }
 0x3a9   :  { %2598 = vmatprep.subr.bf16.mxu0 %v2597_v15 }
 0x3ac   :  { %2600 = vmatpush3.bf16.msra.mxu0 %v2599_v10 }
 0x3ad   :  { %2602 = vmatprep.subr.bf16.mxu0 %v2601_v27 }
 0x3b0   :  { %2604 = vmatpush3.bf16.msra.mxu0 %v2603_v19 }
 0x3b1   :  { %2605 = vmatprep.subr.bf16.mxu0 %v2671_v26 }
 0x466   :  { %v1821_v14 = vpop.f32.mrb[16].mxu0 }
 0x467   :  { %v1822_v11 = vadd.f32 %v1821_v14, %v1748_v25  ;;  %v1823_v9 = vpop.f32.mrb[17].mxu0 }
 0x468   :  { %v1824_v38 = vadd.f32 %v1823_v9, %v1752_v12 }
 0x469   :  { %v1826_v57 = vmax.f32 %v1822_v11, 0.0 }
 0x46a   :  { %v1827_v39 = vmax.f32 %v1824_v38, 0.0 }
 0x46c   :  { %1931 = vmatprep.mubr.f32.mxu0 %v1827_v39 }
 0x46d   :  { %1932 = vmatmul.mubr.f32.vlgmr.msra.gmra.mrb[18].mxu0 %v1826_v57 }
 0x46e   :  { %2607 = vmatpush3.bf16.msra.mxu0 %v2606_v56  ;;  %2242 = vmatprep.mubr.msk.f32.mxu0 %vm2672_vm8, %v2673_v6 }
 0x46f   :  { %2608 = vmatprep.subr.bf16.mxu0 %v2671_v26 }
 0x472   :  { %2610 = vmatpush3.bf16.msra.mxu0 %v2609_v40 }
 0x473   :  { %2611 = vmatprep.subr.bf16.mxu0 %v2671_v26 }
 0x476   :  { %2613 = vmatpush3.bf16.msra.mxu0 %v2612_v54 }
 0x477   :  { %2614 = vmatprep.subr.bf16.mxu0 %v2671_v26 }
 0x47a   :  { %2616 = vmatpush3.bf16.msra.mxu0 %v2615_v45 }
 0x47b   :  { %2617 = vmatprep.subr.bf16.mxu0 %v2671_v26 }
 0x47e   :  { %2619 = vmatpush3.bf16.msra.mxu0 %v2618_v1 }
 0x47f   :  { %2620 = vmatprep.subr.bf16.mxu0 %v2671_v26 }
 0x482   :  { %2622 = vmatpush3.bf16.msra.mxu0 %v2621_v2 }
 0x483   :  { %2623 = vmatprep.subr.bf16.mxu0 %v2671_v26 }
 0x486   :  { %2625 = vmatpush3.bf16.msra.mxu0 %v2624_v47 }
 0x487   :  { %2626 = vmatprep.subr.bf16.mxu0 %v2671_v26 }
 0x48a   :  { %2628 = vmatpush3.bf16.msra.mxu0 %v2627_v43 }
 0x540   :  { %v2161_v58 = vpop.f32.mrb[18].mxu0 }
 0x541   :  { %v2162_v4 = vpop.f32.mrb[19].mxu0 }
 0x542   :  { %v2163_v55 = vadd.f32 %v2162_v4, %v2161_v58 }
 0x544   :  { %v1934_v8 = vadd.f32 %v2163_v55, %v2107_v51 }
 0x546   :  { %v1937_v59 = vmax.f32 %v1934_v8, 0.0 }
 0x548   :  { %2243 = vmatmul.mubr.f32.vlgmr.msra.gmra.mrb[20].mxu0 %v1937_v59 }
 0x61b   :  { %v2027_v61 = vpop.f32.mrb[20].mxu0 }
 0x61c   :  { %v2028_v62 = vadd.f32 %v2108_v60, %v2027_v61  ;;  %v2244_v63 = vpop.f32.mrb[21].mxu0 }
 0x61e   :  { %v2031_v13 = vmax.f32 %v2028_v62, 0.0 }
 0x620   :  { %v2033_v22 = vsel %vm2032_vm9, %v2031_v13, -inf }
 0x621   :  { %2034 = vmax.xlane.f32.xlu0 %v2033_v22 }
 0x6ae   :  { %v2035_v23 = vpop.xlane.xlu0 %2034 }
 0x6af   :  { %v2036_v24 = vsub.f32 %v2031_v13, %v2035_v23 }
 0x6b1   :  { %v2037_v16 = vmul.f32 1.442695, %v2036_v24 }
 0x6b3   :  { %2639 = vpow2.f32 %v2037_v16 }
 0x6bd   :  { %v2640_v31 = vpop.eup %2639 }
 0x6be   :  { %v2039_v18 = vsel %vm2032_vm9, %v2640_v31, 0.0 }
 0x6bf   :  { %2040 = vadd.xlane.f32.xlu0 %v2039_v18 }
 0x74c   :  { %v2041_v34 = vpop.xlane.xlu0 %2040 }
 0x74d   :  { %2641 = vrcp.f32 %v2041_v34 }
 0x757   :  { %v2642_v17 = vpop.eup %2641 }
 0x758   :  { %v2043_v15 = vmul.f32 %v2642_v17, %v2640_v31 }
 0x75a   :  { %2044 = vst.msk [vmem:[#allocation5] sm:$0x3] %vm2032_vm9, %v2043_v15 }
 0x75b   :  { %2654 = shalt.err (!%p2651_p4)
}
 0x75c   :  { %s2655_s4 = scalar_lea.hbm %s4969_s11, 32 }
 0x75d   :  { %p2656_p5 = scmp.ne.s32.totalorder %s4969_s11, %s2655_s4  ;;  %p2659_p6 = scmp.lt.u32.totalorder %s2655_s4, %s4969_s11 }
 0x75f   :  { %p2661_p7 = pnand %p2659_p6, %p2656_p5 }
 0x761   :  { %2664 = shalt.err (!%p2661_p7)
}
 0x762   :  { %2054 = dma.vmem_to_hbm [thread:$0]  %s2052_s9, 32, %s4969_s11, [#allocation6]  }
 0x763   :  { %2669 = dma.done.wait [#allocation6], 32  }
 0x764   :  { %2670 = vsyncadd [#allocation6], 4294967264 }
 0x765   :  { %2058 = vsyncpa [#allocation6], 1 }
 0x766   :  { %2059 = vsyncmov [#allocation4] }
 0x769   :  { %s2060_s3 = vpop.sfrf %2059 }
 0x76a   :  { %p2109_p8 = scmp.ne.s32.totalorder %s2060_s3, 0 }
 0x76c   :  { %2064 = shalt.err (%p2109_p8)  }
 0x76d   :  { %2066 = vsyncmov [#allocation4 + $0x1] }
 0x770   :  { %s2067_s24 = vpop.sfrf %2066 }
 0x771   :  { %p2110_p9 = scmp.ne.s32.totalorder %s2067_s24, 0 }
 0x773   :  { %2071 = shalt.err (%p2110_p9)  }

</bundles_post_ra>
